<compile_context>
chip_gen: v7x
topology: tpu7x:2x2x1
jax: 0.10.0
libtpu: 0.0.40
codegen_flags: <defaults>
</compile_context>

<pallas_src>
import jax
import jax.numpy as jnp
from jax.experimental import pallas as pl
from jax.experimental.pallas import tpu as pltpu

# ----------------------------- model config ---------------------------------
IN_FEATURES = 53
LIN0_OUT = 128
N_HIDDEN = 32          # Config.cfg.hyper.n_hidden
N_LAYERS = 2           # Config.cfg.hyper.n_layers
HEAD_HIDDEN = 64
BN_EPS = 1e-5

BATCH = 8              # also the LSTM sequence length (unbatched LSTM input)
PAD_IN = 56            # 53 padded up to a multiple of 8

# weight-slab row offsets (all multiples of 8)
_R_W0 = 0
_R_W1 = _R_W0 + PAD_IN            # 56
_R_W2 = _R_W1 + 128               # 184   (32 rows, no zero-padding)
_R_WIH0 = _R_W2 + N_HIDDEN        # 216   (32 rows, no zero-padding)
_R_WHH0 = _R_WIH0 + N_HIDDEN      # 248   -- start of contiguous recurrent block
_R_WIH1 = _R_WHH0 + N_HIDDEN      # 280
_R_WHH1 = _R_WIH1 + N_HIDDEN      # 312
_R_W3 = _R_WHH1 + N_HIDDEN        # 344
_R_W4 = _R_W3 + N_HIDDEN          # 376
_W_ROWS = _R_W4 + 128             # 504


# ------------------------------- kernel -------------------------------------
def dscovry_kernel(x_ref, w_ref, b_ref, out_ref):
    H = N_HIDDEN
    f32 = jnp.float32

    def dot(a, b):
        return jnp.dot(a, b, preferred_element_type=jnp.float32)

    def sigmoid(x):
        # Single-EUP-trip sigmoid: 0.5 * (1 + tanh(x/2)).
        return 0.5 + 0.5 * jnp.tanh(0.5 * x)

    biases = b_ref[...]                       # (8, 128): one lane-dense tile
    c0 = biases[0:1, :]
    c1 = biases[1:2, :]
    c2 = biases[2:3, :]
    bl0 = biases[3:4, :]
    bl1 = biases[4:5, :]
    c3 = biases[5:6, :]
    b4 = biases[6:7, :]

    # ---- DSCOVRYBlock MLP: Linear(+folded BN) -> ReLU, dropout = identity.
    h = jnp.maximum(dot(x_ref[...], w_ref[pl.ds(_R_W0, PAD_IN), :]) + c0, 0.0)
    h = jnp.maximum(dot(h, w_ref[pl.ds(_R_W1, 128), :]) + c1, 0.0)        # cols>=H are 0
    h = jnp.maximum(dot(h[:, 0:H], w_ref[pl.ds(_R_W2, H), :]) + c2, 0.0)  # cols>=H are 0

    # ---- stacked LSTM (seq_len = BATCH, feature = H) ------------------------
    # Layer-0 input projection hoisted out of the recurrence (batched matmul).
    gx0 = dot(h[:, 0:H], w_ref[pl.ds(_R_WIH0, H), :]) + bl0               # (8, 4H)

    w_rec = w_ref[pl.ds(_R_WHH0, 3 * H), :]    # (3H, 4H) = [whh0; wih1; whh1]
    w_rec1 = w_ref[pl.ds(_R_WIH1, 2 * H), :]   # (2H, 4H) = [wih1; whh1]

    def cell(gates, c_prev):
        # Gate columns reordered wrapper-side to [i, f, o, g]:
        # one sigmoid over 3H lanes + one tanh over H lanes (per row).
        sg = sigmoid(gates[:, 0:3 * H])
        g = jnp.tanh(gates[:, 3 * H:4 * H])
        c_new = sg[:, H:2 * H] * c_prev + sg[:, 0:H] * g
        h_new = sg[:, 2 * H:3 * H] * jnp.tanh(c_new)
        return h_new, c_new

    zero = jnp.zeros((1, H), f32)
    zero2 = jnp.zeros((1, 2 * H), f32)

    # Step 0 of layer 0: h0_prev = c0_prev = 0, so gates = gx0[0] (no matmul).
    h0, c0s = cell(gx0[0:1, :], zero)
    h1, c1s = zero, zero
    hs1 = []

    # Wavefront: iteration t computes layer-0 step t and layer-1 step t-1
    # with a single (2, 3H) x (3H, 4H) MXU op and one combined cell.
    for t in range(1, BATCH):
        row0 = jnp.concatenate([h0, zero2], axis=1)          # [h0 | 0 | 0 ]
        row1 = jnp.concatenate([zero, h0, h1], axis=1)       # [0  | h0 | h1]
        lhs = jnp.concatenate([row0, row1], axis=0)          # (2, 3H)
        g = dot(lhs, w_rec)                                   # (2, 4H)
        gates = g + jnp.concatenate([gx0[t:t + 1, :], bl1], axis=0)
        c_prev = jnp.concatenate([c0s, c1s], axis=0)          # (2, H)
        h_new, c_new = cell(gates, c_prev)
        h0, c0s = h_new[0:1, :], c_new[0:1, :]
        h1, c1s = h_new[1:2, :], c_new[1:2, :]
        hs1.append(h1)                                        # layer-1 step t-1

    # Final: layer-1 step BATCH-1, one fused (1,2H)x(2H,4H) matmul.
    gates = dot(jnp.concatenate([h0, h1], axis=1), w_rec1) + bl1
    h1, c1s = cell(gates, c1s)
    hs1.append(h1)

    lstm_out = jnp.concatenate(hs1, axis=0)                   # (8, H), registers

    # ---- fused Now/Future heads ---------------------------------------------
    h3 = jnp.maximum(dot(lstm_out, w_ref[pl.ds(_R_W3, H), :]) + c3, 0.0)   # (8,128)
    out_ref[...] = jnp.maximum(dot(h3, w_ref[pl.ds(_R_W4, 128), :]) + b4, 0.0)


# --------------------------- wrapper-side packing -----------------------------
def fold_bn(gamma, beta, running_mean, running_var, eps=BN_EPS):
    scale = gamma / jnp.sqrt(running_var + eps)
    shift = beta - running_mean * scale
    return scale, shift


def _reorder_gates(w):
    """PyTorch gate column blocks [i, f, g, o] -> lane-friendly [i, f, o, g]."""
    i, f, g, o = jnp.split(w, 4, axis=-1)
    return jnp.concatenate([i, f, o, g], axis=-1)


def pack_params(p):
    f32 = jnp.float32
    H = N_HIDDEN

    def pad_to(a, rows, cols):
        return jnp.pad(a, ((0, rows - a.shape[0]), (0, cols - a.shape[1])))

    # Fold eval-mode BatchNorm into the preceding Linear.
    w0 = pad_to(p["w0"] * p["s1"], PAD_IN, 128)
    c0 = p["b0"] * p["s1"] + p["t1"]
    w1 = pad_to(p["w1"] * p["s2"], 128, 128)
    c1 = pad_to(p["b1"] * p["s2"] + p["t2"], 1, 128)
    w2 = pad_to(p["w2"] * p["s2"], H, 128)                       # 32 rows, lane-padded
    c2 = pad_to(p["b2"] * p["s2"] + p["t2"], 1, 128)

    # LSTM weights: already transposed to (in,out); reorder gates to [i,f,o,g].
    wih0 = _reorder_gates(p["wih0"])                             # (H, 4H) = (32,128)
    whh0 = _reorder_gates(p["whh0"])
    bl0 = _reorder_gates(p["bl0"])
    wih1 = _reorder_gates(p["wih1"])
    whh1 = _reorder_gates(p["whh1"])
    bl1 = _reorder_gates(p["bl1"])

    # Fuse the Now/Future heads: first layers side-by-side, final layers block-diag.
    w3 = jnp.concatenate([p["w3n"] * p["sn"], p["w3f"] * p["sf"]], axis=1)   # (H,128)
    c3 = jnp.concatenate([p["b3n"] * p["sn"] + p["tn"],
                          p["b3f"] * p["sf"] + p["tf"]], axis=1)             # (1,128)
    w4 = jnp.zeros((128, 128), f32)
    w4 = w4.at[0:HEAD_HIDDEN, 0].set(p["w4n"][:, 0])
    w4 = w4.at[HEAD_HIDDEN:2 * HEAD_HIDDEN, 1].set(p["w4f"][:, 0])
    b4 = jnp.zeros((1, 128), f32)
    b4 = b4.at[0, 0].set(p["b4n"][0, 0]).at[0, 1].set(p["b4f"][0, 0])

    w_slab = jnp.concatenate(
        [w0, w1, w2, wih0, whh0, wih1, whh1, w3, w4], axis=0).astype(f32)
    b_slab = jnp.concatenate(
        [c0, c1, c2, bl0, bl1, c3, b4, jnp.zeros((1, 128), f32)], axis=0).astype(f32)
    assert w_slab.shape == (_W_ROWS, 128)
    assert b_slab.shape == (8, 128)
    return w_slab, b_slab


def dscovry_forward(x, params):
    w_slab, b_slab = pack_params(params)
    x_pad = jnp.pad(x.astype(jnp.float32), ((0, 0), (0, PAD_IN - IN_FEATURES)))

    vmem = pl.BlockSpec(memory_space=pltpu.MemorySpace.VMEM)
    out = pl.pallas_call(
        dscovry_kernel,
        out_shape=jax.ShapeDtypeStruct((BATCH, 128), jnp.float32),
        in_specs=[vmem, vmem, vmem],
        out_specs=vmem,
    )(x_pad, w_slab, b_slab)
    # Lane-dense (8,128) output slab: col 0 = NowBlock, col 1 = FutureBlock.
    return out[:, 0:1], out[:, 1:2]


# --------------------------- param construction ------------------------------
def make_params(key):
    ks = iter(jax.random.split(key, 64))
    f32 = jnp.float32

    def nrm(shape, s=0.1):
        return (s * jax.random.normal(next(ks), shape)).astype(f32)

    def bn(n):
        gamma = 1.0 + 0.1 * jax.random.normal(next(ks), (n,)).astype(f32)
        beta = 0.1 * jax.random.normal(next(ks), (n,)).astype(f32)
        rmean = 0.1 * jax.random.normal(next(ks), (n,)).astype(f32)
        rvar = (1.0 + 0.1 * jax.random.uniform(next(ks), (n,))).astype(f32)
        s, t = fold_bn(gamma, beta, rmean, rvar)
        return s.reshape(1, n), t.reshape(1, n)

    H = N_HIDDEN
    p = {}
    # DSCOVRYBlock: weights stored pre-transposed to (in, out)
    p["w0"], p["b0"] = nrm((IN_FEATURES, LIN0_OUT)), nrm((1, LIN0_OUT))
    p["s1"], p["t1"] = bn(LIN0_OUT)
    p["w1"], p["b1"] = nrm((LIN0_OUT, H)), nrm((1, H))
    p["s2"], p["t2"] = bn(H)
    p["w2"], p["b2"] = nrm((H, H)), nrm((1, H))
    # LSTM layers: W_ih^T (H,4H), W_hh^T (H,4H), b = b_ih + b_hh (1,4H), gates [i,f,g,o]
    for layer in range(N_LAYERS):
        p[f"wih{layer}"] = nrm((H, 4 * H))
        p[f"whh{layer}"] = nrm((H, 4 * H))
        p[f"bl{layer}"] = nrm((1, 4 * H)) + nrm((1, 4 * H))
    # NowBlock
    p["w3n"], p["b3n"] = nrm((H, HEAD_HIDDEN)), nrm((1, HEAD_HIDDEN))
    p["sn"], p["tn"] = bn(HEAD_HIDDEN)
    p["w4n"], p["b4n"] = nrm((HEAD_HIDDEN, 1)), nrm((1, 1))
    # FutureBlock
    p["w3f"], p["b3f"] = nrm((H, HEAD_HIDDEN)), nrm((1, HEAD_HIDDEN))
    p["sf"], p["tf"] = bn(HEAD_HIDDEN)
    p["w4f"], p["b4f"] = nrm((HEAD_HIDDEN, 1)), nrm((1, 1))
    return p


# ----------------------------- pure-JAX reference ----------------------------
def reference_forward(x, p):
    H = N_HIDDEN

    def lin(v, w, b):
        return v @ w + b

    h = jnp.maximum(lin(x, p["w0"], p["b0"]) * p["s1"] + p["t1"], 0.0)
    h = jnp.maximum(lin(h, p["w1"], p["b1"]) * p["s2"] + p["t2"], 0.0)
    h = jnp.maximum(lin(h, p["w2"], p["b2"]) * p["s2"] + p["t2"], 0.0)

    seq = h
    for layer in range(N_LAYERS):
        wih, whh, b = p[f"wih{layer}"], p[f"whh{layer}"], p[f"bl{layer}"]
        hh = jnp.zeros((1, H), jnp.float32)
        cc = jnp.zeros((1, H), jnp.float32)
        outs = []
        for t in range(BATCH):
            x_t = seq[t:t + 1]
            gates = x_t @ wih + hh @ whh + b
            i_g = jax.nn.sigmoid(gates[:, 0 * H:1 * H])
            f_g = jax.nn.sigmoid(gates[:, 1 * H:2 * H])
            g_g = jnp.tanh(gates[:, 2 * H:3 * H])
            o_g = jax.nn.sigmoid(gates[:, 3 * H:4 * H])
            cc = f_g * cc + i_g * g_g
            hh = o_g * jnp.tanh(cc)
            outs.append(hh)
        seq = jnp.concatenate(outs, axis=0)

    hn = jnp.maximum(lin(seq, p["w3n"], p["b3n"]) * p["sn"] + p["tn"], 0.0)
    y1 = jnp.maximum(lin(hn, p["w4n"], p["b4n"]), 0.0)
    hf = jnp.maximum(lin(seq, p["w3f"], p["b3f"]) * p["sf"] + p["tf"], 0.0)
    y2 = jnp.maximum(lin(hf, p["w4f"], p["b4f"]), 0.0)
    return y1, y2


# ---------------------------------- main --------------------------------------
if __name__ == "__main__":
    key = jax.random.PRNGKey(0)
    kx, kp = jax.random.split(key)
    x = jax.random.normal(kx, (BATCH, IN_FEATURES), dtype=jnp.float32)
    params = make_params(kp)

    fwd = jax.jit(dscovry_forward)
    y1, y2 = jax.block_until_ready(fwd(x, params))
    r1, r2 = reference_forward(x, params)

    assert y1.shape == (BATCH, 1) and y2.shape == (BATCH, 1)
    assert jnp.allclose(y1, r1, atol=1e-3, rtol=1e-3), (y1, r1)
    assert jnp.allclose(y2, r2, atol=1e-3, rtol=1e-3), (y2, r2)
    print("KERNEL_OK")
</pallas_src>

<mosaic_0001>
module attributes {stable_mosaic.version = 11 : i64} {
  func.func @dscovry_kernel(%arg0: memref<8x56xf32, #tpu.memory_space<vmem>>, %arg1: memref<504x128xf32, #tpu.memory_space<vmem>>, %arg2: memref<8x128xf32, #tpu.memory_space<vmem>>, %arg3: memref<8x128xf32, #tpu.memory_space<vmem>>) attributes {dimension_semantics = [], scalar_prefetch = 0 : i64, scratch_operands = 0 : i64, tpu.core_type = #tpu.core_type<tc>} {
    %c0 = arith.constant 0 : index
    %c0_0 = arith.constant 0 : index
    %0 = vector.load %arg2[%c0, %c0_0] : memref<8x128xf32, #tpu.memory_space<vmem>>, vector<8x128xf32>
    %1 = vector.extract_strided_slice %0 {offsets = [0, 0], sizes = [1, 128], strides = [1, 1]} : vector<8x128xf32> to vector<1x128xf32>
    %2 = vector.extract_strided_slice %0 {offsets = [1, 0], sizes = [1, 128], strides = [1, 1]} : vector<8x128xf32> to vector<1x128xf32>
    %3 = vector.extract_strided_slice %0 {offsets = [2, 0], sizes = [1, 128], strides = [1, 1]} : vector<8x128xf32> to vector<1x128xf32>
    %4 = vector.extract_strided_slice %0 {offsets = [3, 0], sizes = [1, 128], strides = [1, 1]} : vector<8x128xf32> to vector<1x128xf32>
    %5 = vector.extract_strided_slice %0 {offsets = [4, 0], sizes = [1, 128], strides = [1, 1]} : vector<8x128xf32> to vector<1x128xf32>
    %6 = vector.extract_strided_slice %0 {offsets = [5, 0], sizes = [1, 128], strides = [1, 1]} : vector<8x128xf32> to vector<1x128xf32>
    %7 = vector.extract_strided_slice %0 {offsets = [6, 0], sizes = [1, 128], strides = [1, 1]} : vector<8x128xf32> to vector<1x128xf32>
    %c0_1 = arith.constant 0 : index
    %c0_2 = arith.constant 0 : index
    %8 = vector.load %arg0[%c0_1, %c0_2] : memref<8x56xf32, #tpu.memory_space<vmem>>, vector<8x56xf32>
    %c0_3 = arith.constant 0 : index
    %c0_4 = arith.constant 0 : index
    %9 = vector.load %arg1[%c0_3, %c0_4] : memref<504x128xf32, #tpu.memory_space<vmem>>, vector<56x128xf32>
    %cst = arith.constant dense<0.000000e+00> : vector<8x128xf32>
    %10 = tpu.matmul %8, %9, %cst {dimension_numbers = #tpu.dot_dimension_numbers<[1], [0], [0], [1], [0, 0, 1, 1], [], []>} : vector<8x56xf32>, vector<56x128xf32>, vector<8x128xf32> -> vector<8x128xf32>
    %11 = vector.broadcast %1 : vector<1x128xf32> to vector<8x128xf32>
    %12 = arith.addf %10, %11 : vector<8x128xf32>
    %cst_5 = arith.constant 0.000000e+00 : f32
    %13 = vector.broadcast %cst_5 : f32 to vector<8x128xf32>
    %14 = arith.maximumf %12, %13 : vector<8x128xf32>
    %c56 = arith.constant 56 : index
    %c0_6 = arith.constant 0 : index
    %15 = vector.load %arg1[%c56, %c0_6] : memref<504x128xf32, #tpu.memory_space<vmem>>, vector<128x128xf32>
    %cst_7 = arith.constant dense<0.000000e+00> : vector<8x128xf32>
    %16 = tpu.matmul %14, %15, %cst_7 {dimension_numbers = #tpu.dot_dimension_numbers<[1], [0], [0], [1], [0, 0, 1, 1], [], []>} : vector<8x128xf32>, vector<128x128xf32>, vector<8x128xf32> -> vector<8x128xf32>
    %17 = vector.broadcast %2 : vector<1x128xf32> to vector<8x128xf32>
    %18 = arith.addf %16, %17 : vector<8x128xf32>
    %cst_8 = arith.constant 0.000000e+00 : f32
    %19 = vector.broadcast %cst_8 : f32 to vector<8x128xf32>
    %20 = arith.maximumf %18, %19 : vector<8x128xf32>
    %21 = vector.extract_strided_slice %20 {offsets = [0, 0], sizes = [8, 32], strides = [1, 1]} : vector<8x128xf32> to vector<8x32xf32>
    %c184 = arith.constant 184 : index
    %c0_9 = arith.constant 0 : index
    %22 = vector.load %arg1[%c184, %c0_9] : memref<504x128xf32, #tpu.memory_space<vmem>>, vector<32x128xf32>
    %cst_10 = arith.constant dense<0.000000e+00> : vector<8x128xf32>
    %23 = tpu.matmul %21, %22, %cst_10 {dimension_numbers = #tpu.dot_dimension_numbers<[1], [0], [0], [1], [0, 0, 1, 1], [], []>} : vector<8x32xf32>, vector<32x128xf32>, vector<8x128xf32> -> vector<8x128xf32>
    %24 = vector.broadcast %3 : vector<1x128xf32> to vector<8x128xf32>
    %25 = arith.addf %23, %24 : vector<8x128xf32>
    %cst_11 = arith.constant 0.000000e+00 : f32
    %26 = vector.broadcast %cst_11 : f32 to vector<8x128xf32>
    %27 = arith.maximumf %25, %26 : vector<8x128xf32>
    %28 = vector.extract_strided_slice %27 {offsets = [0, 0], sizes = [8, 32], strides = [1, 1]} : vector<8x128xf32> to vector<8x32xf32>
    %c216 = arith.constant 216 : index
    %c0_12 = arith.constant 0 : index
    %29 = vector.load %arg1[%c216, %c0_12] : memref<504x128xf32, #tpu.memory_space<vmem>>, vector<32x128xf32>
    %cst_13 = arith.constant dense<0.000000e+00> : vector<8x128xf32>
    %30 = tpu.matmul %28, %29, %cst_13 {dimension_numbers = #tpu.dot_dimension_numbers<[1], [0], [0], [1], [0, 0, 1, 1], [], []>} : vector<8x32xf32>, vector<32x128xf32>, vector<8x128xf32> -> vector<8x128xf32>
    %31 = vector.broadcast %4 : vector<1x128xf32> to vector<8x128xf32>
    %32 = arith.addf %30, %31 : vector<8x128xf32>
    %c248 = arith.constant 248 : index
    %c0_14 = arith.constant 0 : index
    %33 = vector.load %arg1[%c248, %c0_14] : memref<504x128xf32, #tpu.memory_space<vmem>>, vector<96x128xf32>
    %c280 = arith.constant 280 : index
    %c0_15 = arith.constant 0 : index
    %34 = vector.load %arg1[%c280, %c0_15] : memref<504x128xf32, #tpu.memory_space<vmem>>, vector<64x128xf32>
    %cst_16 = arith.constant 0.000000e+00 : f32
    %35 = vector.broadcast %cst_16 : f32 to vector<1x32xf32>
    %cst_17 = arith.constant 0.000000e+00 : f32
    %36 = vector.broadcast %cst_17 : f32 to vector<1x64xf32>
    %37 = vector.extract_strided_slice %32 {offsets = [0, 0], sizes = [1, 128], strides = [1, 1]} : vector<8x128xf32> to vector<1x128xf32>
    %38 = vector.extract_strided_slice %37 {offsets = [0, 0], sizes = [1, 96], strides = [1, 1]} : vector<1x128xf32> to vector<1x96xf32>
    %cst_18 = arith.constant 5.000000e-01 : f32
    %39 = vector.broadcast %cst_18 : f32 to vector<1x96xf32>
    %40 = arith.mulf %39, %38 : vector<1x96xf32>
    %41 = math.tanh %40 : vector<1x96xf32>
    %cst_19 = arith.constant 5.000000e-01 : f32
    %42 = vector.broadcast %cst_19 : f32 to vector<1x96xf32>
    %43 = arith.mulf %42, %41 : vector<1x96xf32>
    %cst_20 = arith.constant 5.000000e-01 : f32
    %44 = vector.broadcast %cst_20 : f32 to vector<1x96xf32>
    %45 = arith.addf %44, %43 : vector<1x96xf32>
    %46 = vector.extract_strided_slice %37 {offsets = [0, 96], sizes = [1, 32], strides = [1, 1]} : vector<1x128xf32> to vector<1x32xf32>
    %47 = math.tanh %46 : vector<1x32xf32>
    %48 = vector.extract_strided_slice %45 {offsets = [0, 32], sizes = [1, 32], strides = [1, 1]} : vector<1x96xf32> to vector<1x32xf32>
    %49 = arith.mulf %48, %35 : vector<1x32xf32>
    %50 = vector.extract_strided_slice %45 {offsets = [0, 0], sizes = [1, 32], strides = [1, 1]} : vector<1x96xf32> to vector<1x32xf32>
    %51 = arith.mulf %50, %47 : vector<1x32xf32>
    %52 = arith.addf %49, %51 : vector<1x32xf32>
    %53 = vector.extract_strided_slice %45 {offsets = [0, 64], sizes = [1, 32], strides = [1, 1]} : vector<1x96xf32> to vector<1x32xf32>
    %54 = math.tanh %52 : vector<1x32xf32>
    %55 = arith.mulf %53, %54 : vector<1x32xf32>
    %56 = tpu.concatenate %55, %36 in 1 : vector<1x32xf32>, vector<1x64xf32> -> vector<1x96xf32>
    %57 = tpu.concatenate %35, %55, %35 in 1 : vector<1x32xf32>, vector<1x32xf32>, vector<1x32xf32> -> vector<1x96xf32>
    %58 = tpu.concatenate %56, %57 in 0 : vector<1x96xf32>, vector<1x96xf32> -> vector<2x96xf32>
    %cst_21 = arith.constant dense<0.000000e+00> : vector<2x128xf32>
    %59 = tpu.matmul %58, %33, %cst_21 {dimension_numbers = #tpu.dot_dimension_numbers<[1], [0], [0], [1], [0, 0, 1, 1], [], []>} : vector<2x96xf32>, vector<96x128xf32>, vector<2x128xf32> -> vector<2x128xf32>
    %60 = vector.extract_strided_slice %32 {offsets = [1, 0], sizes = [1, 128], strides = [1, 1]} : vector<8x128xf32> to vector<1x128xf32>
    %61 = tpu.concatenate %60, %5 in 0 : vector<1x128xf32>, vector<1x128xf32> -> vector<2x128xf32>
    %62 = arith.addf %59, %61 : vector<2x128xf32>
    %63 = tpu.concatenate %52, %35 in 0 : vector<1x32xf32>, vector<1x32xf32> -> vector<2x32xf32>
    %64 = vector.extract_strided_slice %62 {offsets = [0, 0], sizes = [2, 96], strides = [1, 1]} : vector<2x128xf32> to vector<2x96xf32>
    %cst_22 = arith.constant 5.000000e-01 : f32
    %65 = vector.broadcast %cst_22 : f32 to vector<2x96xf32>
    %66 = arith.mulf %65, %64 : vector<2x96xf32>
    %67 = math.tanh %66 : vector<2x96xf32>
    %cst_23 = arith.constant 5.000000e-01 : f32
    %68 = vector.broadcast %cst_23 : f32 to vector<2x96xf32>
    %69 = arith.mulf %68, %67 : vector<2x96xf32>
    %cst_24 = arith.constant 5.000000e-01 : f32
    %70 = vector.broadcast %cst_24 : f32 to vector<2x96xf32>
    %71 = arith.addf %70, %69 : vector<2x96xf32>
    %72 = vector.extract_strided_slice %62 {offsets = [0, 96], sizes = [2, 32], strides = [1, 1]} : vector<2x128xf32> to vector<2x32xf32>
    %73 = math.tanh %72 : vector<2x32xf32>
    %74 = vector.extract_strided_slice %71 {offsets = [0, 32], sizes = [2, 32], strides = [1, 1]} : vector<2x96xf32> to vector<2x32xf32>
    %75 = arith.mulf %74, %63 : vector<2x32xf32>
    %76 = vector.extract_strided_slice %71 {offsets = [0, 0], sizes = [2, 32], strides = [1, 1]} : vector<2x96xf32> to vector<2x32xf32>
    %77 = arith.mulf %76, %73 : vector<2x32xf32>
    %78 = arith.addf %75, %77 : vector<2x32xf32>
    %79 = vector.extract_strided_slice %71 {offsets = [0, 64], sizes = [2, 32], strides = [1, 1]} : vector<2x96xf32> to vector<2x32xf32>
    %80 = math.tanh %78 : vector<2x32xf32>
    %81 = arith.mulf %79, %80 : vector<2x32xf32>
    %82 = vector.extract_strided_slice %81 {offsets = [0, 0], sizes = [1, 32], strides = [1, 1]} : vector<2x32xf32> to vector<1x32xf32>
    %83 = vector.extract_strided_slice %78 {offsets = [0, 0], sizes = [1, 32], strides = [1, 1]} : vector<2x32xf32> to vector<1x32xf32>
    %84 = vector.extract_strided_slice %81 {offsets = [1, 0], sizes = [1, 32], strides = [1, 1]} : vector<2x32xf32> to vector<1x32xf32>
    %85 = vector.extract_strided_slice %78 {offsets = [1, 0], sizes = [1, 32], strides = [1, 1]} : vector<2x32xf32> to vector<1x32xf32>
    %86 = tpu.concatenate %82, %36 in 1 : vector<1x32xf32>, vector<1x64xf32> -> vector<1x96xf32>
    %87 = tpu.concatenate %35, %82, %84 in 1 : vector<1x32xf32>, vector<1x32xf32>, vector<1x32xf32> -> vector<1x96xf32>
    %88 = tpu.concatenate %86, %87 in 0 : vector<1x96xf32>, vector<1x96xf32> -> vector<2x96xf32>
    %cst_25 = arith.constant dense<0.000000e+00> : vector<2x128xf32>
    %89 = tpu.matmul %88, %33, %cst_25 {dimension_numbers = #tpu.dot_dimension_numbers<[1], [0], [0], [1], [0, 0, 1, 1], [], []>} : vector<2x96xf32>, vector<96x128xf32>, vector<2x128xf32> -> vector<2x128xf32>
    %90 = vector.extract_strided_slice %32 {offsets = [2, 0], sizes = [1, 128], strides = [1, 1]} : vector<8x128xf32> to vector<1x128xf32>
    %91 = tpu.concatenate %90, %5 in 0 : vector<1x128xf32>, vector<1x128xf32> -> vector<2x128xf32>
    %92 = arith.addf %89, %91 : vector<2x128xf32>
    %93 = tpu.concatenate %83, %85 in 0 : vector<1x32xf32>, vector<1x32xf32> -> vector<2x32xf32>
    %94 = vector.extract_strided_slice %92 {offsets = [0, 0], sizes = [2, 96], strides = [1, 1]} : vector<2x128xf32> to vector<2x96xf32>
    %cst_26 = arith.constant 5.000000e-01 : f32
    %95 = vector.broadcast %cst_26 : f32 to vector<2x96xf32>
    %96 = arith.mulf %95, %94 : vector<2x96xf32>
    %97 = math.tanh %96 : vector<2x96xf32>
    %cst_27 = arith.constant 5.000000e-01 : f32
    %98 = vector.broadcast %cst_27 : f32 to vector<2x96xf32>
    %99 = arith.mulf %98, %97 : vector<2x96xf32>
    %cst_28 = arith.constant 5.000000e-01 : f32
    %100 = vector.broadcast %cst_28 : f32 to vector<2x96xf32>
    %101 = arith.addf %100, %99 : vector<2x96xf32>
    %102 = vector.extract_strided_slice %92 {offsets = [0, 96], sizes = [2, 32], strides = [1, 1]} : vector<2x128xf32> to vector<2x32xf32>
    %103 = math.tanh %102 : vector<2x32xf32>
    %104 = vector.extract_strided_slice %101 {offsets = [0, 32], sizes = [2, 32], strides = [1, 1]} : vector<2x96xf32> to vector<2x32xf32>
    %105 = arith.mulf %104, %93 : vector<2x32xf32>
    %106 = vector.extract_strided_slice %101 {offsets = [0, 0], sizes = [2, 32], strides = [1, 1]} : vector<2x96xf32> to vector<2x32xf32>
    %107 = arith.mulf %106, %103 : vector<2x32xf32>
    %108 = arith.addf %105, %107 : vector<2x32xf32>
    %109 = vector.extract_strided_slice %101 {offsets = [0, 64], sizes = [2, 32], strides = [1, 1]} : vector<2x96xf32> to vector<2x32xf32>
    %110 = math.tanh %108 : vector<2x32xf32>
    %111 = arith.mulf %109, %110 : vector<2x32xf32>
    %112 = vector.extract_strided_slice %111 {offsets = [0, 0], sizes = [1, 32], strides = [1, 1]} : vector<2x32xf32> to vector<1x32xf32>
    %113 = vector.extract_strided_slice %108 {offsets = [0, 0], sizes = [1, 32], strides = [1, 1]} : vector<2x32xf32> to vector<1x32xf32>
    %114 = vector.extract_strided_slice %111 {offsets = [1, 0], sizes = [1, 32], strides = [1, 1]} : vector<2x32xf32> to vector<1x32xf32>
    %115 = vector.extract_strided_slice %108 {offsets = [1, 0], sizes = [1, 32], strides = [1, 1]} : vector<2x32xf32> to vector<1x32xf32>
    %116 = tpu.concatenate %112, %36 in 1 : vector<1x32xf32>, vector<1x64xf32> -> vector<1x96xf32>
    %117 = tpu.concatenate %35, %112, %114 in 1 : vector<1x32xf32>, vector<1x32xf32>, vector<1x32xf32> -> vector<1x96xf32>
    %118 = tpu.concatenate %116, %117 in 0 : vector<1x96xf32>, vector<1x96xf32> -> vector<2x96xf32>
    %cst_29 = arith.constant dense<0.000000e+00> : vector<2x128xf32>
    %119 = tpu.matmul %118, %33, %cst_29 {dimension_numbers = #tpu.dot_dimension_numbers<[1], [0], [0], [1], [0, 0, 1, 1], [], []>} : vector<2x96xf32>, vector<96x128xf32>, vector<2x128xf32> -> vector<2x128xf32>
    %120 = vector.extract_strided_slice %32 {offsets = [3, 0], sizes = [1, 128], strides = [1, 1]} : vector<8x128xf32> to vector<1x128xf32>
    %121 = tpu.concatenate %120, %5 in 0 : vector<1x128xf32>, vector<1x128xf32> -> vector<2x128xf32>
    %122 = arith.addf %119, %121 : vector<2x128xf32>
    %123 = tpu.concatenate %113, %115 in 0 : vector<1x32xf32>, vector<1x32xf32> -> vector<2x32xf32>
    %124 = vector.extract_strided_slice %122 {offsets = [0, 0], sizes = [2, 96], strides = [1, 1]} : vector<2x128xf32> to vector<2x96xf32>
    %cst_30 = arith.constant 5.000000e-01 : f32
    %125 = vector.broadcast %cst_30 : f32 to vector<2x96xf32>
    %126 = arith.mulf %125, %124 : vector<2x96xf32>
    %127 = math.tanh %126 : vector<2x96xf32>
    %cst_31 = arith.constant 5.000000e-01 : f32
    %128 = vector.broadcast %cst_31 : f32 to vector<2x96xf32>
    %129 = arith.mulf %128, %127 : vector<2x96xf32>
    %cst_32 = arith.constant 5.000000e-01 : f32
    %130 = vector.broadcast %cst_32 : f32 to vector<2x96xf32>
    %131 = arith.addf %130, %129 : vector<2x96xf32>
    %132 = vector.extract_strided_slice %122 {offsets = [0, 96], sizes = [2, 32], strides = [1, 1]} : vector<2x128xf32> to vector<2x32xf32>
    %133 = math.tanh %132 : vector<2x32xf32>
    %134 = vector.extract_strided_slice %131 {offsets = [0, 32], sizes = [2, 32], strides = [1, 1]} : vector<2x96xf32> to vector<2x32xf32>
    %135 = arith.mulf %134, %123 : vector<2x32xf32>
    %136 = vector.extract_strided_slice %131 {offsets = [0, 0], sizes = [2, 32], strides = [1, 1]} : vector<2x96xf32> to vector<2x32xf32>
    %137 = arith.mulf %136, %133 : vector<2x32xf32>
    %138 = arith.addf %135, %137 : vector<2x32xf32>
    %139 = vector.extract_strided_slice %131 {offsets = [0, 64], sizes = [2, 32], strides = [1, 1]} : vector<2x96xf32> to vector<2x32xf32>
    %140 = math.tanh %138 : vector<2x32xf32>
    %141 = arith.mulf %139, %140 : vector<2x32xf32>
    %142 = vector.extract_strided_slice %141 {offsets = [0, 0], sizes = [1, 32], strides = [1, 1]} : vector<2x32xf32> to vector<1x32xf32>
    %143 = vector.extract_strided_slice %138 {offsets = [0, 0], sizes = [1, 32], strides = [1, 1]} : vector<2x32xf32> to vector<1x32xf32>
    %144 = vector.extract_strided_slice %141 {offsets = [1, 0], sizes = [1, 32], strides = [1, 1]} : vector<2x32xf32> to vector<1x32xf32>
    %145 = vector.extract_strided_slice %138 {offsets = [1, 0], sizes = [1, 32], strides = [1, 1]} : vector<2x32xf32> to vector<1x32xf32>
    %146 = tpu.concatenate %142, %36 in 1 : vector<1x32xf32>, vector<1x64xf32> -> vector<1x96xf32>
    %147 = tpu.concatenate %35, %142, %144 in 1 : vector<1x32xf32>, vector<1x32xf32>, vector<1x32xf32> -> vector<1x96xf32>
    %148 = tpu.concatenate %146, %147 in 0 : vector<1x96xf32>, vector<1x96xf32> -> vector<2x96xf32>
    %cst_33 = arith.constant dense<0.000000e+00> : vector<2x128xf32>
    %149 = tpu.matmul %148, %33, %cst_33 {dimension_numbers = #tpu.dot_dimension_numbers<[1], [0], [0], [1], [0, 0, 1, 1], [], []>} : vector<2x96xf32>, vector<96x128xf32>, vector<2x128xf32> -> vector<2x128xf32>
    %150 = vector.extract_strided_slice %32 {offsets = [4, 0], sizes = [1, 128], strides = [1, 1]} : vector<8x128xf32> to vector<1x128xf32>
    %151 = tpu.concatenate %150, %5 in 0 : vector<1x128xf32>, vector<1x128xf32> -> vector<2x128xf32>
    %152 = arith.addf %149, %151 : vector<2x128xf32>
    %153 = tpu.concatenate %143, %145 in 0 : vector<1x32xf32>, vector<1x32xf32> -> vector<2x32xf32>
    %154 = vector.extract_strided_slice %152 {offsets = [0, 0], sizes = [2, 96], strides = [1, 1]} : vector<2x128xf32> to vector<2x96xf32>
    %cst_34 = arith.constant 5.000000e-01 : f32
    %155 = vector.broadcast %cst_34 : f32 to vector<2x96xf32>
    %156 = arith.mulf %155, %154 : vector<2x96xf32>
    %157 = math.tanh %156 : vector<2x96xf32>
    %cst_35 = arith.constant 5.000000e-01 : f32
    %158 = vector.broadcast %cst_35 : f32 to vector<2x96xf32>
    %159 = arith.mulf %158, %157 : vector<2x96xf32>
    %cst_36 = arith.constant 5.000000e-01 : f32
    %160 = vector.broadcast %cst_36 : f32 to vector<2x96xf32>
    %161 = arith.addf %160, %159 : vector<2x96xf32>
    %162 = vector.extract_strided_slice %152 {offsets = [0, 96], sizes = [2, 32], strides = [1, 1]} : vector<2x128xf32> to vector<2x32xf32>
    %163 = math.tanh %162 : vector<2x32xf32>
    %164 = vector.extract_strided_slice %161 {offsets = [0, 32], sizes = [2, 32], strides = [1, 1]} : vector<2x96xf32> to vector<2x32xf32>
    %165 = arith.mulf %164, %153 : vector<2x32xf32>
    %166 = vector.extract_strided_slice %161 {offsets = [0, 0], sizes = [2, 32], strides = [1, 1]} : vector<2x96xf32> to vector<2x32xf32>
    %167 = arith.mulf %166, %163 : vector<2x32xf32>
    %168 = arith.addf %165, %167 : vector<2x32xf32>
    %169 = vector.extract_strided_slice %161 {offsets = [0, 64], sizes = [2, 32], strides = [1, 1]} : vector<2x96xf32> to vector<2x32xf32>
    %170 = math.tanh %168 : vector<2x32xf32>
    %171 = arith.mulf %169, %170 : vector<2x32xf32>
    %172 = vector.extract_strided_slice %171 {offsets = [0, 0], sizes = [1, 32], strides = [1, 1]} : vector<2x32xf32> to vector<1x32xf32>
    %173 = vector.extract_strided_slice %168 {offsets = [0, 0], sizes = [1, 32], strides = [1, 1]} : vector<2x32xf32> to vector<1x32xf32>
    %174 = vector.extract_strided_slice %171 {offsets = [1, 0], sizes = [1, 32], strides = [1, 1]} : vector<2x32xf32> to vector<1x32xf32>
    %175 = vector.extract_strided_slice %168 {offsets = [1, 0], sizes = [1, 32], strides = [1, 1]} : vector<2x32xf32> to vector<1x32xf32>
    %176 = tpu.concatenate %172, %36 in 1 : vector<1x32xf32>, vector<1x64xf32> -> vector<1x96xf32>
    %177 = tpu.concatenate %35, %172, %174 in 1 : vector<1x32xf32>, vector<1x32xf32>, vector<1x32xf32> -> vector<1x96xf32>
    %178 = tpu.concatenate %176, %177 in 0 : vector<1x96xf32>, vector<1x96xf32> -> vector<2x96xf32>
    %cst_37 = arith.constant dense<0.000000e+00> : vector<2x128xf32>
    %179 = tpu.matmul %178, %33, %cst_37 {dimension_numbers = #tpu.dot_dimension_numbers<[1], [0], [0], [1], [0, 0, 1, 1], [], []>} : vector<2x96xf32>, vector<96x128xf32>, vector<2x128xf32> -> vector<2x128xf32>
    %180 = vector.extract_strided_slice %32 {offsets = [5, 0], sizes = [1, 128], strides = [1, 1]} : vector<8x128xf32> to vector<1x128xf32>
    %181 = tpu.concatenate %180, %5 in 0 : vector<1x128xf32>, vector<1x128xf32> -> vector<2x128xf32>
    %182 = arith.addf %179, %181 : vector<2x128xf32>
    %183 = tpu.concatenate %173, %175 in 0 : vector<1x32xf32>, vector<1x32xf32> -> vector<2x32xf32>
    %184 = vector.extract_strided_slice %182 {offsets = [0, 0], sizes = [2, 96], strides = [1, 1]} : vector<2x128xf32> to vector<2x96xf32>
    %cst_38 = arith.constant 5.000000e-01 : f32
    %185 = vector.broadcast %cst_38 : f32 to vector<2x96xf32>
    %186 = arith.mulf %185, %184 : vector<2x96xf32>
    %187 = math.tanh %186 : vector<2x96xf32>
    %cst_39 = arith.constant 5.000000e-01 : f32
    %188 = vector.broadcast %cst_39 : f32 to vector<2x96xf32>
    %189 = arith.mulf %188, %187 : vector<2x96xf32>
    %cst_40 = arith.constant 5.000000e-01 : f32
    %190 = vector.broadcast %cst_40 : f32 to vector<2x96xf32>
    %191 = arith.addf %190, %189 : vector<2x96xf32>
    %192 = vector.extract_strided_slice %182 {offsets = [0, 96], sizes = [2, 32], strides = [1, 1]} : vector<2x128xf32> to vector<2x32xf32>
    %193 = math.tanh %192 : vector<2x32xf32>
    %194 = vector.extract_strided_slice %191 {offsets = [0, 32], sizes = [2, 32], strides = [1, 1]} : vector<2x96xf32> to vector<2x32xf32>
    %195 = arith.mulf %194, %183 : vector<2x32xf32>
    %196 = vector.extract_strided_slice %191 {offsets = [0, 0], sizes = [2, 32], strides = [1, 1]} : vector<2x96xf32> to vector<2x32xf32>
    %197 = arith.mulf %196, %193 : vector<2x32xf32>
    %198 = arith.addf %195, %197 : vector<2x32xf32>
    %199 = vector.extract_strided_slice %191 {offsets = [0, 64], sizes = [2, 32], strides = [1, 1]} : vector<2x96xf32> to vector<2x32xf32>
    %200 = math.tanh %198 : vector<2x32xf32>
    %201 = arith.mulf %199, %200 : vector<2x32xf32>
    %202 = vector.extract_strided_slice %201 {offsets = [0, 0], sizes = [1, 32], strides = [1, 1]} : vector<2x32xf32> to vector<1x32xf32>
    %203 = vector.extract_strided_slice %198 {offsets = [0, 0], sizes = [1, 32], strides = [1, 1]} : vector<2x32xf32> to vector<1x32xf32>
    %204 = vector.extract_strided_slice %201 {offsets = [1, 0], sizes = [1, 32], strides = [1, 1]} : vector<2x32xf32> to vector<1x32xf32>
    %205 = vector.extract_strided_slice %198 {offsets = [1, 0], sizes = [1, 32], strides = [1, 1]} : vector<2x32xf32> to vector<1x32xf32>
    %206 = tpu.concatenate %202, %36 in 1 : vector<1x32xf32>, vector<1x64xf32> -> vector<1x96xf32>
    %207 = tpu.concatenate %35, %202, %204 in 1 : vector<1x32xf32>, vector<1x32xf32>, vector<1x32xf32> -> vector<1x96xf32>
    %208 = tpu.concatenate %206, %207 in 0 : vector<1x96xf32>, vector<1x96xf32> -> vector<2x96xf32>
    %cst_41 = arith.constant dense<0.000000e+00> : vector<2x128xf32>
    %209 = tpu.matmul %208, %33, %cst_41 {dimension_numbers = #tpu.dot_dimension_numbers<[1], [0], [0], [1], [0, 0, 1, 1], [], []>} : vector<2x96xf32>, vector<96x128xf32>, vector<2x128xf32> -> vector<2x128xf32>
    %210 = vector.extract_strided_slice %32 {offsets = [6, 0], sizes = [1, 128], strides = [1, 1]} : vector<8x128xf32> to vector<1x128xf32>
    %211 = tpu.concatenate %210, %5 in 0 : vector<1x128xf32>, vector<1x128xf32> -> vector<2x128xf32>
    %212 = arith.addf %209, %211 : vector<2x128xf32>
    %213 = tpu.concatenate %203, %205 in 0 : vector<1x32xf32>, vector<1x32xf32> -> vector<2x32xf32>
    %214 = vector.extract_strided_slice %212 {offsets = [0, 0], sizes = [2, 96], strides = [1, 1]} : vector<2x128xf32> to vector<2x96xf32>
    %cst_42 = arith.constant 5.000000e-01 : f32
    %215 = vector.broadcast %cst_42 : f32 to vector<2x96xf32>
    %216 = arith.mulf %215, %214 : vector<2x96xf32>
    %217 = math.tanh %216 : vector<2x96xf32>
    %cst_43 = arith.constant 5.000000e-01 : f32
    %218 = vector.broadcast %cst_43 : f32 to vector<2x96xf32>
    %219 = arith.mulf %218, %217 : vector<2x96xf32>
    %cst_44 = arith.constant 5.000000e-01 : f32
    %220 = vector.broadcast %cst_44 : f32 to vector<2x96xf32>
    %221 = arith.addf %220, %219 : vector<2x96xf32>
    %222 = vector.extract_strided_slice %212 {offsets = [0, 96], sizes = [2, 32], strides = [1, 1]} : vector<2x128xf32> to vector<2x32xf32>
    %223 = math.tanh %222 : vector<2x32xf32>
    %224 = vector.extract_strided_slice %221 {offsets = [0, 32], sizes = [2, 32], strides = [1, 1]} : vector<2x96xf32> to vector<2x32xf32>
    %225 = arith.mulf %224, %213 : vector<2x32xf32>
    %226 = vector.extract_strided_slice %221 {offsets = [0, 0], sizes = [2, 32], strides = [1, 1]} : vector<2x96xf32> to vector<2x32xf32>
    %227 = arith.mulf %226, %223 : vector<2x32xf32>
    %228 = arith.addf %225, %227 : vector<2x32xf32>
    %229 = vector.extract_strided_slice %221 {offsets = [0, 64], sizes = [2, 32], strides = [1, 1]} : vector<2x96xf32> to vector<2x32xf32>
    %230 = math.tanh %228 : vector<2x32xf32>
    %231 = arith.mulf %229, %230 : vector<2x32xf32>
    %232 = vector.extract_strided_slice %231 {offsets = [0, 0], sizes = [1, 32], strides = [1, 1]} : vector<2x32xf32> to vector<1x32xf32>
    %233 = vector.extract_strided_slice %228 {offsets = [0, 0], sizes = [1, 32], strides = [1, 1]} : vector<2x32xf32> to vector<1x32xf32>
    %234 = vector.extract_strided_slice %231 {offsets = [1, 0], sizes = [1, 32], strides = [1, 1]} : vector<2x32xf32> to vector<1x32xf32>
    %235 = vector.extract_strided_slice %228 {offsets = [1, 0], sizes = [1, 32], strides = [1, 1]} : vector<2x32xf32> to vector<1x32xf32>
    %236 = tpu.concatenate %232, %36 in 1 : vector<1x32xf32>, vector<1x64xf32> -> vector<1x96xf32>
    %237 = tpu.concatenate %35, %232, %234 in 1 : vector<1x32xf32>, vector<1x32xf32>, vector<1x32xf32> -> vector<1x96xf32>
    %238 = tpu.concatenate %236, %237 in 0 : vector<1x96xf32>, vector<1x96xf32> -> vector<2x96xf32>
    %cst_45 = arith.constant dense<0.000000e+00> : vector<2x128xf32>
    %239 = tpu.matmul %238, %33, %cst_45 {dimension_numbers = #tpu.dot_dimension_numbers<[1], [0], [0], [1], [0, 0, 1, 1], [], []>} : vector<2x96xf32>, vector<96x128xf32>, vector<2x128xf32> -> vector<2x128xf32>
    %240 = vector.extract_strided_slice %32 {offsets = [7, 0], sizes = [1, 128], strides = [1, 1]} : vector<8x128xf32> to vector<1x128xf32>
    %241 = tpu.concatenate %240, %5 in 0 : vector<1x128xf32>, vector<1x128xf32> -> vector<2x128xf32>
    %242 = arith.addf %239, %241 : vector<2x128xf32>
    %243 = tpu.concatenate %233, %235 in 0 : vector<1x32xf32>, vector<1x32xf32> -> vector<2x32xf32>
    %244 = vector.extract_strided_slice %242 {offsets = [0, 0], sizes = [2, 96], strides = [1, 1]} : vector<2x128xf32> to vector<2x96xf32>
    %cst_46 = arith.constant 5.000000e-01 : f32
    %245 = vector.broadcast %cst_46 : f32 to vector<2x96xf32>
    %246 = arith.mulf %245, %244 : vector<2x96xf32>
    %247 = math.tanh %246 : vector<2x96xf32>
    %cst_47 = arith.constant 5.000000e-01 : f32
    %248 = vector.broadcast %cst_47 : f32 to vector<2x96xf32>
    %249 = arith.mulf %248, %247 : vector<2x96xf32>
    %cst_48 = arith.constant 5.000000e-01 : f32
    %250 = vector.broadcast %cst_48 : f32 to vector<2x96xf32>
    %251 = arith.addf %250, %249 : vector<2x96xf32>
    %252 = vector.extract_strided_slice %242 {offsets = [0, 96], sizes = [2, 32], strides = [1, 1]} : vector<2x128xf32> to vector<2x32xf32>
    %253 = math.tanh %252 : vector<2x32xf32>
    %254 = vector.extract_strided_slice %251 {offsets = [0, 32], sizes = [2, 32], strides = [1, 1]} : vector<2x96xf32> to vector<2x32xf32>
    %255 = arith.mulf %254, %243 : vector<2x32xf32>
    %256 = vector.extract_strided_slice %251 {offsets = [0, 0], sizes = [2, 32], strides = [1, 1]} : vector<2x96xf32> to vector<2x32xf32>
    %257 = arith.mulf %256, %253 : vector<2x32xf32>
    %258 = arith.addf %255, %257 : vector<2x32xf32>
    %259 = vector.extract_strided_slice %251 {offsets = [0, 64], sizes = [2, 32], strides = [1, 1]} : vector<2x96xf32> to vector<2x32xf32>
    %260 = math.tanh %258 : vector<2x32xf32>
    %261 = arith.mulf %259, %260 : vector<2x32xf32>
    %262 = vector.extract_strided_slice %261 {offsets = [0, 0], sizes = [1, 32], strides = [1, 1]} : vector<2x32xf32> to vector<1x32xf32>
    %263 = vector.extract_strided_slice %261 {offsets = [1, 0], sizes = [1, 32], strides = [1, 1]} : vector<2x32xf32> to vector<1x32xf32>
    %264 = vector.extract_strided_slice %258 {offsets = [1, 0], sizes = [1, 32], strides = [1, 1]} : vector<2x32xf32> to vector<1x32xf32>
    %265 = tpu.concatenate %262, %263 in 1 : vector<1x32xf32>, vector<1x32xf32> -> vector<1x64xf32>
    %cst_49 = arith.constant dense<0.000000e+00> : vector<1x128xf32>
    %266 = tpu.matmul %265, %34, %cst_49 {dimension_numbers = #tpu.dot_dimension_numbers<[1], [0], [0], [1], [0, 0, 1, 1], [], []>} : vector<1x64xf32>, vector<64x128xf32>, vector<1x128xf32> -> vector<1x128xf32>
    %267 = arith.addf %266, %5 : vector<1x128xf32>
    %268 = vector.extract_strided_slice %267 {offsets = [0, 0], sizes = [1, 96], strides = [1, 1]} : vector<1x128xf32> to vector<1x96xf32>
    %cst_50 = arith.constant 5.000000e-01 : f32
    %269 = vector.broadcast %cst_50 : f32 to vector<1x96xf32>
    %270 = arith.mulf %269, %268 : vector<1x96xf32>
    %271 = math.tanh %270 : vector<1x96xf32>
    %cst_51 = arith.constant 5.000000e-01 : f32
    %272 = vector.broadcast %cst_51 : f32 to vector<1x96xf32>
    %273 = arith.mulf %272, %271 : vector<1x96xf32>
    %cst_52 = arith.constant 5.000000e-01 : f32
    %274 = vector.broadcast %cst_52 : f32 to vector<1x96xf32>
    %275 = arith.addf %274, %273 : vector<1x96xf32>
    %276 = vector.extract_strided_slice %267 {offsets = [0, 96], sizes = [1, 32], strides = [1, 1]} : vector<1x128xf32> to vector<1x32xf32>
    %277 = math.tanh %276 : vector<1x32xf32>
    %278 = vector.extract_strided_slice %275 {offsets = [0, 32], sizes = [1, 32], strides = [1, 1]} : vector<1x96xf32> to vector<1x32xf32>
    %279 = arith.mulf %278, %264 : vector<1x32xf32>
    %280 = vector.extract_strided_slice %275 {offsets = [0, 0], sizes = [1, 32], strides = [1, 1]} : vector<1x96xf32> to vector<1x32xf32>
    %281 = arith.mulf %280, %277 : vector<1x32xf32>
    %282 = arith.addf %279, %281 : vector<1x32xf32>
    %283 = vector.extract_strided_slice %275 {offsets = [0, 64], sizes = [1, 32], strides = [1, 1]} : vector<1x96xf32> to vector<1x32xf32>
    %284 = math.tanh %282 : vector<1x32xf32>
    %285 = arith.mulf %283, %284 : vector<1x32xf32>
    %286 = tpu.concatenate %84, %114, %144, %174, %204, %234, %263, %285 in 0 : vector<1x32xf32>, vector<1x32xf32>, vector<1x32xf32>, vector<1x32xf32>, vector<1x32xf32>, vector<1x32xf32>, vector<1x32xf32>, vector<1x32xf32> -> vector<8x32xf32>
    %c344 = arith.constant 344 : index
    %c0_53 = arith.constant 0 : index
    %287 = vector.load %arg1[%c344, %c0_53] : memref<504x128xf32, #tpu.memory_space<vmem>>, vector<32x128xf32>
    %cst_54 = arith.constant dense<0.000000e+00> : vector<8x128xf32>
    %288 = tpu.matmul %286, %287, %cst_54 {dimension_numbers = #tpu.dot_dimension_numbers<[1], [0], [0], [1], [0, 0, 1, 1], [], []>} : vector<8x32xf32>, vector<32x128xf32>, vector<8x128xf32> -> vector<8x128xf32>
    %289 = vector.broadcast %6 : vector<1x128xf32> to vector<8x128xf32>
    %290 = arith.addf %288, %289 : vector<8x128xf32>
    %cst_55 = arith.constant 0.000000e+00 : f32
    %291 = vector.broadcast %cst_55 : f32 to vector<8x128xf32>
    %292 = arith.maximumf %290, %291 : vector<8x128xf32>
    %c376 = arith.constant 376 : index
    %c0_56 = arith.constant 0 : index
    %293 = vector.load %arg1[%c376, %c0_56] : memref<504x128xf32, #tpu.memory_space<vmem>>, vector<128x128xf32>
    %cst_57 = arith.constant dense<0.000000e+00> : vector<8x128xf32>
    %294 = tpu.matmul %292, %293, %cst_57 {dimension_numbers = #tpu.dot_dimension_numbers<[1], [0], [0], [1], [0, 0, 1, 1], [], []>} : vector<8x128xf32>, vector<128x128xf32>, vector<8x128xf32> -> vector<8x128xf32>
    %295 = vector.broadcast %7 : vector<1x128xf32> to vector<8x128xf32>
    %296 = arith.addf %294, %295 : vector<8x128xf32>
    %cst_58 = arith.constant 0.000000e+00 : f32
    %297 = vector.broadcast %cst_58 : f32 to vector<8x128xf32>
    %298 = arith.maximumf %296, %297 : vector<8x128xf32>
    %c0_59 = arith.constant 0 : index
    %c0_60 = arith.constant 0 : index
    %299 = vector.load %arg3[%c0_59, %c0_60] : memref<8x128xf32, #tpu.memory_space<vmem>>, vector<8x128xf32>
    tpu.vector_store %arg3[%c0_59, %c0_60], %298 {strides = array<i32>} : memref<8x128xf32, #tpu.memory_space<vmem>>, vector<8x128xf32>,
    return
  }
}

</mosaic_0001>

<bundles_post_ra>
// kernel: dscovry_forward.1
= control target key start
LH: loop header
LB: loop body
LE: loop exit
PB: predicated region body
PF: predicated region fallthrough
CT: control target
= control target key end

     0   :  { %v2281_v0 = vmov 0.0|0.0   ;;  %vm2282_vm0 = vmmov 0   ;;  %v2283_v4 = vmov 0.0   ;;  %vm27_vm1 = vcmask 457728   ;;  %s2284_s22 = smov 32   ;;  %s2285_s19 = smov 64   ;;  %s2826_s1 = inlined_call_operand.vmem [shape: f32[504,128], index: 1, kind: input, shape index: {}]   ;;  %s2827_s0 = inlined_call_operand.vmem [shape: f32[8,56], index: 0, kind: input, shape index: {}]   ;;  %s2828_s2 = inlined_call_operand.vmem [shape: f32[8,128], index: 2, kind: input, shape index: {}]   ;;  %s2829_s3 = inlined_call_operand.vmem [shape: f32[8,128], index: 3, kind: output, shape index: {}]  }
   0x1   :  { %2007 = vmatprep.subr.bf16.mxu1 %v2281_v0  ;;  %v16_v1 = vld [vmem:[%s2826_s1] sm:$0xff]  ;;  %v17_v2 = vld [vmem:[%s2826_s1 + $0x8] sm:$0xff]  ;;  %v18_v3 = vld [vmem:[%s2826_s1 + $0x10] sm:$0xff]  ;;  %1693 = vmatprep.mubr.msk.f32.mxu1 %vm2282_vm0, %v2283_v4  ;;  %v23_v40 = vlaneseq  ;;  %vm201_vm2 = vcmask 261120   ;;  %vm405_vm3 = vcmask 1040384   ;;  %s2286_s20 = smov 96  }
   0x2   :  { %v2008_v5 = vpack.c.bf16 %v17_v2, %v16_v1  ;;  %v19_v6 = vld [vmem:[%s2826_s1 + $0x18] sm:$0xff]  ;;  %2040 = vmatprep.subr.bf16.mxu0 %v2281_v0  ;;  %1739 = vmatprep.mubr.msk.f32.mxu0 %vm2282_vm0, %v2283_v4  ;;  %v20_v8 = vld [vmem:[%s2826_s1 + $0x20] sm:$0xff]  ;;  %v21_v9 = vld [vmem:[%s2826_s1 + $0x28] sm:$0xff]  ;;  %vm400_vm4 = vcmask 523264   ;;  %vm414_vm5 = vcmask 785408   ;;  %vm1318_vm6 = vcmask 1041408  }
   0x3   :  { %v2011_v7 = vpack.c.bf16 %v19_v6, %v18_v3  ;;  %v2014_v10 = vpack.c.bf16 %v21_v9, %v20_v8  ;;  %v102_v11 = vld [vmem:[%s2826_s1 + $0x38] sm:$0xff]  ;;  %v103_v12 = vld [vmem:[%s2826_s1 + $0x40] sm:$0xff]  ;;  %v22_v13 = vld [vmem:[%s2826_s1 + $0x30] sm:$0xff]  ;;  %v2406_v41 = vshrl.u32 %v23_v40, 7  ;;  %vm1320_vm7 = vcmask 1042432  }
   0x4   :  { %2009 = vmatpush3.bf16.msra.mxu1 %v2008_v5  ;;  %v15_v14 = vld [vmem:[%s2827_s0] sm:$0xff]  ;;  %v2017_v15 = vpack.c.bf16 %v103_v12, %v102_v11  ;;  %v104_v16 = vld [vmem:[%s2826_s1 + $0x48] sm:$0xff]  ;;  %v105_v17 = vld [vmem:[%s2826_s1 + $0x50] sm:$0xff]  ;;  %vm1322_vm8 = vcmask 1043456   ;;  %vm1324_vm9 = vcmask 1044480   ;;  %vm1326_vm10 = vcmask 1045504  }
   0x5   :  { %2010 = vmatprep.subr.bf16.mxu1 %v2281_v0  ;;  %v2020_v18 = vpack.c.bf16 %v105_v17, %v104_v16  ;;  %v106_v19 = vld [vmem:[%s2826_s1 + $0x58] sm:$0xff]  ;;  %v107_v20 = vld [vmem:[%s2826_s1 + $0x60] sm:$0xff]  ;;  %v108_v22 = vld [vmem:[%s2826_s1 + $0x68] sm:$0xff]  ;;  %v25_v42 = vsub.s32 0, %v2406_v41  ;;  %v120_v52 = vsub.s32 1, %v2406_v41  ;;  %v199_v1 = vsub.s32 2, %v2406_v41 }
   0x6   :  { %v2023_v21 = vpack.c.bf16 %v107_v20, %v106_v19  ;;  %v109_v23 = vld [vmem:[%s2826_s1 + $0x70] sm:$0xff]  ;;  %v110_v25 = vld [vmem:[%s2826_s1 + $0x78] sm:$0xff]  ;;  %v111_v26 = vld [vmem:[%s2826_s1 + $0x80] sm:$0xff]  ;;  %v282_v8 = vsub.s32 3, %v2406_v41  ;;  %vm1328_vm11 = vcmask 1046528  }
   0x7   :  { %v2026_v24 = vpack.c.bf16 %v109_v23, %v108_v22  ;;  %v2029_v27 = vpack.c.bf16 %v111_v26, %v110_v25  ;;  %v112_v28 = vld [vmem:[%s2826_s1 + $0x88] sm:$0xff]  ;;  %v113_v29 = vld [vmem:[%s2826_s1 + $0x90] sm:$0xff]  ;;  %v114_v31 = vld [vmem:[%s2826_s1 + $0x98] sm:$0xff] }
   0x8   :  { %2012 = vmatpush3.bf16.msra.mxu1 %v2011_v7  ;;  %v2032_v30 = vpack.c.bf16 %v113_v29, %v112_v28  ;;  %v115_v32 = vld [vmem:[%s2826_s1 + $0xa0] sm:$0xff]  ;;  %v116_v34 = vld [vmem:[%s2826_s1 + $0xa8] sm:$0xff]  ;;  %v117_v35 = vld [vmem:[%s2826_s1 + $0xb0] sm:$0xff] }
   0x9   :  { %2013 = vmatprep.subr.bf16.mxu1 %v2281_v0  ;;  %v2035_v33 = vpack.c.bf16 %v115_v32, %v114_v31  ;;  %v2038_v36 = vpack.c.bf16 %v117_v35, %v116_v34  ;;  %v193_v37 = vld [vmem:[%s2826_s1 + $0xb8] sm:$0xff]  ;;  %v194_v38 = vld [vmem:[%s2826_s1 + $0xc0] sm:$0xff]  ;;  %v195_v49 = vld [vmem:[%s2826_s1 + $0xc8] sm:$0xff] }
   0xa   :  { %v2041_v39 = vpack.c.bf16 %v194_v38, %v193_v37  ;;  %v2412_v43 = vld [vmem:[%s2828_s2] sm:$0xff]  ;;  %v196_v50 = vld [vmem:[%s2826_s1 + $0xd0] sm:$0xff]  ;;  %v276_v54 = vld [vmem:[%s2826_s1 + $0xd8] sm:$0xff] }
   0xb   :  { %v26_v44 = vrot.slane %v2412_v43, %v25_v42  ;;  %v2044_v51 = vpack.c.bf16 %v196_v50, %v195_v49  ;;  %v121_v53 = vrot.slane %v2412_v43, %v120_v52  ;;  %v277_v55 = vld [vmem:[%s2826_s1 + $0xe0] sm:$0xff]  ;;  %v278_v61 = vld [vmem:[%s2826_s1 + $0xe8] sm:$0xff]  ;;  %v279_v62 = vld [vmem:[%s2826_s1 + $0xf0] sm:$0xff]  ;;  %v200_v2 = vrot.slane %v2412_v43, %v199_v1 }
   0xc   :  { %2015 = vmatpush3.bf16.msra.mxu1 %v2014_v10  ;;  %2042 = vmatpush3.bf16.msra.mxu0 %v2041_v39  ;;  %v2047_v59 = vpack.c.bf16 %v277_v55, %v276_v54  ;;  %v2050_v63 = vpack.c.bf16 %v279_v62, %v278_v61  ;;  %v283_v9 = vrot.slane %v2412_v43, %v282_v8  ;;  %v358_v37 = vld [vmem:[%s2826_s1 + $0x100] sm:$0xff]  ;;  %v359_v38 = vld [vmem:[%s2826_s1 + $0x108] sm:$0xff]  ;;  %v360_v40 = vld [vmem:[%s2826_s1 + $0x110] sm:$0xff] }
   0xd   :  { %1691 = vmatprep.subr.mxu1 %v2283_v4  ;;  %2043 = vmatprep.subr.bf16.mxu0 %v2281_v0  ;;  %v2507_v42 = vpack.c.bf16 %v360_v40, %v359_v38  ;;  %v366_v52 = vld [vmem:[%s2826_s1 + $0x140] sm:$0xff]  ;;  %v367_v54 = vld [vmem:[%s2826_s1 + $0x148] sm:$0xff]  ;;  %v368_v55 = vld [vmem:[%s2826_s1 + $0x150] sm:$0xff] }
  0x10   :  { %1692 = vmatpush3.msra.mxu1 %v22_v13  ;;  %2045 = vmatpush3.bf16.msra.mxu0 %v2044_v51  ;;  %v2453_v13 = vrot.slane %v2412_v43, 3  ;;  %v365_v51 = vld [vmem:[%s2826_s1 + $0x138] sm:$0xff] }
  0x11   :  { %1694 = vmatmul.mubr.msk.f32.vlgmr.msra.gmra.mrb[0].mxu1 %vm27_vm1, %v15_v14  ;;  %2016 = vmatprep.subr.bf16.mxu1 %v2281_v0 }
  0x12   :  { %2018 = vmatpush3.bf16.msra.mxu1 %v2017_v15  ;;  %1728 = vmatprep.mubr.msk.f32.mxu1 %vm2282_vm0, %v2283_v4 }
  0x13   :  { %2019 = vmatprep.subr.bf16.mxu1 %v2281_v0  ;;  %2046 = vmatprep.subr.bf16.mxu0 %v2281_v0 }
  0x16   :  { %2021 = vmatpush3.bf16.msra.mxu1 %v2020_v18 }
  0x17   :  { %2022 = vmatprep.subr.bf16.mxu1 %v2281_v0 }
  0x1a   :  { %2024 = vmatpush3.bf16.msra.mxu1 %v2023_v21 }
  0x1b   :  { %2025 = vmatprep.subr.bf16.mxu1 %v2281_v0 }
  0x1e   :  { %2027 = vmatpush3.bf16.msra.mxu1 %v2026_v24 }
  0x1f   :  { %2028 = vmatprep.subr.bf16.mxu1 %v2281_v0 }
  0x22   :  { %2030 = vmatpush3.bf16.msra.mxu1 %v2029_v27 }
  0x23   :  { %2031 = vmatprep.subr.bf16.mxu1 %v2281_v0 }
  0x26   :  { %2033 = vmatpush3.bf16.msra.mxu1 %v2032_v30 }
  0x27   :  { %2034 = vmatprep.subr.bf16.mxu1 %v2281_v0 }
  0x2a   :  { %2036 = vmatpush3.bf16.msra.mxu1 %v2035_v33 }
  0x2b   :  { %2037 = vmatprep.subr.bf16.mxu1 %v2281_v0 }
  0x2e   :  { %2039 = vmatpush3.bf16.msra.mxu1 %v2038_v36  ;;  %v357_v36 = vld [vmem:[%s2826_s1 + $0xf8] sm:$0xff] }
  0x2f   :  { %2070 = vmatprep.subr.bf16.mxu1 %v2281_v0  ;;  %v2501_v39 = vpack.c.bf16 %v358_v37, %v357_v36 }
  0xe4   :  { %v97_v45 = vpop.f32.mrb[0].mxu1 }
  0xe5   :  { %v98_v46 = vadd.f32 %v97_v45, %v26_v44  ;;  %v1695_v47 = vpop.f32.mrb[1].mxu1  ;;  %v361_v44 = vld [vmem:[%s2826_s1 + $0x118] sm:$0xff]  ;;  %v362_v45 = vld [vmem:[%s2826_s1 + $0x120] sm:$0xff] }
  0xe6   :  { %v363_v47 = vld [vmem:[%s2826_s1 + $0x128] sm:$0xff] }
  0xe7   :  { %v101_v48 = vmax.f32 %v98_v46, 0.0  ;;  %v2519_v46 = vpack.c.bf16 %v362_v45, %v361_v44 }
  0xe9   :  { %1729 = vmatmul.mubr.f32.vlgmr.msra.gmra.mrb[2].mxu1 %v101_v48  ;;  %v364_v48 = vld [vmem:[%s2826_s1 + $0x130] sm:$0xff] }
  0xea   :  { %1804 = vmatprep.mubr.msk.f32.mxu1 %vm2282_vm0, %v2283_v4  ;;  %2072 = vmatpush3.bf16.msra.mxu1 %v2501_v39  ;;  %v2532_v50 = vpack.c.bf16 %v364_v48, %v363_v47 }
  0xeb   :  { %2073 = vmatprep.subr.bf16.mxu1 %v2281_v0 }
  0xee   :  { %2075 = vmatpush3.bf16.msra.mxu1 %v2507_v42 }
  0xef   :  { %2076 = vmatprep.subr.bf16.mxu1 %v2281_v0 }
  0xf2   :  { %2078 = vmatpush3.bf16.msra.mxu1 %v2519_v46 }
  0xf3   :  { %2079 = vmatprep.subr.bf16.mxu1 %v2281_v0 }
  0xf6   :  { %2081 = vmatpush3.bf16.msra.mxu1 %v2532_v50 }
  0xf7   :  { %2082 = vmatprep.subr.bf16.mxu1 %v2281_v0 }
 0x1bc   :  { %v188_v56 = vpop.f32.mrb[2].mxu1 }
 0x1bd   :  { %v189_v57 = vadd.f32 %v188_v56, %v121_v53  ;;  %v1730_v58 = vpop.f32.mrb[3].mxu1  ;;  %v2544_v53 = vpack.c.bf16 %v366_v52, %v365_v51  ;;  %v2559_v56 = vpack.c.bf16 %v368_v55, %v367_v54 }
 0x1bf   :  { %v192_v60 = vmax.f32 %v189_v57, 0.0  ;;  %2084 = vmatpush3.bf16.msra.mxu1 %v2544_v53 }
 0x1c0   :  { %2085 = vmatprep.subr.bf16.mxu1 %v2281_v0 }
 0x1c1   :  { %1740 = vmatmul.mubr.msk.f32.vlgmr.msra.gmra.mrb[0].mxu0 %vm201_vm2, %v192_v60 }
 0x1c2   :  { %2048 = vmatpush3.bf16.msra.mxu0 %v2047_v59  ;;  %1750 = vmatprep.mubr.msk.f32.mxu0 %vm2282_vm0, %v2283_v4 }
 0x1c3   :  { %2049 = vmatprep.subr.bf16.mxu0 %v2281_v0  ;;  %2087 = vmatpush3.bf16.msra.mxu1 %v2559_v56 }
 0x1c4   :  { %2106 = vmatprep.subr.bf16.mxu1 %v2281_v0 }
 0x1c6   :  { %2051 = vmatpush3.bf16.msra.mxu0 %v2050_v63 }
 0x1c7   :  { %2052 = vmatprep.subr.bf16.mxu0 %v2281_v0 }
 0x294   :  { %v271_v3 = vpop.f32.mrb[0].mxu0 }
 0x295   :  { %v272_v5 = vadd.f32 %v271_v3, %v200_v2  ;;  %v1741_v6 = vpop.f32.mrb[1].mxu0 }
 0x297   :  { %v275_v7 = vmax.f32 %v272_v5, 0.0 }
 0x299   :  { %1751 = vmatmul.mubr.msk.f32.vlgmr.msra.gmra.mrb[2].mxu0 %vm201_vm2, %v275_v7 }
 0x29a   :  { %1777 = vmatprep.mubr.msk.f32.mxu0 %vm2282_vm0, %v2283_v4  ;;  %2054 = vmatpush3.bf16.msra.mxu0 %v2501_v39 }
 0x29b   :  { %2055 = vmatprep.subr.bf16.mxu0 %v2281_v0 }
 0x29e   :  { %2057 = vmatpush3.bf16.msra.mxu0 %v2507_v42 }
 0x29f   :  { %2058 = vmatprep.subr.bf16.mxu0 %v2281_v0 }
 0x2a2   :  { %2060 = vmatpush3.bf16.msra.mxu0 %v2519_v46 }
 0x2a3   :  { %2061 = vmatprep.subr.bf16.mxu0 %v2281_v0 }
 0x2a6   :  { %2063 = vmatpush3.bf16.msra.mxu0 %v2532_v50 }
 0x2a7   :  { %2064 = vmatprep.subr.bf16.mxu0 %v2281_v0 }
 0x2aa   :  { %2066 = vmatpush3.bf16.msra.mxu0 %v2544_v53 }
 0x2ab   :  { %2067 = vmatprep.subr.bf16.mxu0 %v2281_v0 }
 0x2ae   :  { %2069 = vmatpush3.bf16.msra.mxu0 %v2559_v56 }
 0x2af   :  { %2088 = vmatprep.subr.bf16.mxu0 %v2281_v0 }
 0x36c   :  { %v353_v10 = vpop.f32.mrb[2].mxu0 }
 0x36d   :  { %v2450_v11 = vadd.f32 %v353_v10, %v283_v9  ;;  %v1752_v12 = vpop.f32.mrb[3].mxu0 }
 0x36f   :  { %2226 = vtanh.f32 %v2450_v11  ;;  %v527_v14 = vrot.slane %v2450_v11, 2  ;;  %v641_v15 = vrot.slane %v2450_v11, 3  ;;  %v755_v16 = vrot.slane %v2450_v11, 4 }
 0x370   :  { %v869_v17 = vrot.slane %v2450_v11, 5  ;;  %v983_v18 = vrot.slane %v2450_v11, 6  ;;  %v1097_v20 = vrot.slane %v2450_v11, 7  ;;  %v369_v27 = vmul.f32 0.5, %v2450_v11 }
 0x371   :  { %v2463_v19 = vsel %vm405_vm3, %v527_v14, %v2453_v13  ;;  %v2468_v21 = vsel %vm405_vm3, %v641_v15, %v2453_v13  ;;  %v2472_v22 = vsel %vm405_vm3, %v755_v16, %v2453_v13  ;;  %v408_v3 = vrot.slane %v2450_v11, 1 }
 0x372   :  { %v2476_v23 = vsel %vm405_vm3, %v869_v17, %v2453_v13  ;;  %v2480_v24 = vsel %vm405_vm3, %v983_v18, %v2453_v13  ;;  %v2484_v25 = vsel %vm405_vm3, %v1097_v20, %v2453_v13  ;;  %2228 = vtanh.f32 %v369_v27 }
 0x373   :  { %v413_v5 = vsel %vm405_vm3, %v408_v3, %v2453_v13 }
 0x379   :  { %v2227_v26 = vpop.eup %2226 }
 0x37a   :  { %376 = vrot.lane.b32.xlu0 %v2227_v26, %s2284_s22 }
 0x37c   :  { %v2229_v28 = vpop.eup %2228 }
 0x37d   :  { %v371_v29 = vmul.f32 0.5, %v2229_v28 }
 0x37f   :  { %v372_v30 = vadd.f32 0.5, %v371_v29 }
 0x381   :  { %v374_v33 = vmul.f32 0.0, %v372_v30 }
 0x3ec   :  { %v377_v31 = vpop.permute.xlu0 %376 }
 0x3ed   :  { %v379_v32 = vmul.f32 %v377_v31, %v372_v30 }
 0x3ef   :  { %381 = vrot.lane.b32.xlu0 %v379_v32, %s2284_s22 }
 0x461   :  { %v382_v34 = vpop.permute.xlu0 %381 }
 0x462   :  { %v2489_v35 = vadd.f32 %v382_v34, %v374_v33 }
 0x464   :  { %2230 = vtanh.f32 %v2489_v35  ;;  %v488_v11 = vsel %vm405_vm3, %v2489_v35, 0.0 }
 0x46e   :  { %v2231_v49 = vpop.eup %2230 }
 0x46f   :  { %387 = vrot.lane.b32.xlu1 %v2231_v49, %s2284_s22 }
 0x4e1   :  { %v388_v57 = vpop.permute.xlu1 %387 }
 0x4e2   :  { %v390_v58 = vmul.f32 %v388_v57, %v372_v30 }
 0x4e4   :  { %392 = vrot.lane.b32.xlu0 %v390_v58, %s2285_s19  ;;  %396 = vrot.lane.b32.xlu1 %v390_v58, %s2286_s20 }
 0x556   :  { %v397_v59 = vpop.permute.xlu1 %396  ;;  %v393_v60 = vpop.permute.xlu0 %392 }
 0x557   :  { %v399_v61 = vsel %vm201_vm2, 0.0, %v397_v59  ;;  %v395_v1 = vsel %vm201_vm2, %v393_v60, 0.0 }
 0x558   :  { %v401_v62 = vsel %vm400_vm4, %v399_v61, 0.0 }
 0x559   :  { %v403_v63 = vrot.slane %v401_v62, 7 }
 0x55b   :  { %v406_v2 = vsel %vm405_vm3, %v395_v1, %v403_v63 }
 0x55c   :  { %1778 = vmatmul.mubr.msk.f32.vlgmr.msra.gmra.mrb[4].mxu0 %vm414_vm5, %v406_v2 }
 0x55d   :  { %2090 = vmatpush3.bf16.msra.mxu0 %v2501_v39  ;;  %1831 = vmatprep.mubr.msk.f32.mxu0 %vm2282_vm0, %v2283_v4 }
 0x55e   :  { %2091 = vmatprep.subr.bf16.mxu0 %v2281_v0 }
 0x561   :  { %2093 = vmatpush3.bf16.msra.mxu0 %v2507_v42 }
 0x562   :  { %2094 = vmatprep.subr.bf16.mxu0 %v2281_v0 }
 0x565   :  { %2096 = vmatpush3.bf16.msra.mxu0 %v2519_v46 }
 0x566   :  { %2097 = vmatprep.subr.bf16.mxu0 %v2281_v0 }
 0x569   :  { %2099 = vmatpush3.bf16.msra.mxu0 %v2532_v50 }
 0x56a   :  { %2100 = vmatprep.subr.bf16.mxu0 %v2281_v0 }
 0x56d   :  { %2102 = vmatpush3.bf16.msra.mxu0 %v2544_v53 }
 0x56e   :  { %2103 = vmatprep.subr.bf16.mxu0 %v2281_v0 }
 0x571   :  { %2105 = vmatpush3.bf16.msra.mxu0 %v2559_v56 }
 0x572   :  { %2124 = vmatprep.subr.bf16.mxu0 %v2281_v0 }
 0x62f   :  { %v484_v6 = vpop.f32.mrb[4].mxu0 }
 0x630   :  { %v485_v7 = vadd.f32 %v484_v6, %v413_v5  ;;  %v1779_v8 = vpop.f32.mrb[5].mxu0 }
 0x632   :  { %2232 = vtanh.f32 %v485_v7  ;;  %v489_v10 = vmul.f32 0.5, %v485_v7 }
 0x634   :  { %2234 = vtanh.f32 %v489_v10 }
 0x63c   :  { %v2233_v9 = vpop.eup %2232 }
 0x63d   :  { %496 = vrot.lane.b32.xlu1 %v2233_v9, %s2284_s22 }
 0x63e   :  { %v2235_v12 = vpop.eup %2234 }
 0x63f   :  { %v491_v14 = vmul.f32 0.5, %v2235_v12 }
 0x641   :  { %v492_v15 = vadd.f32 0.5, %v491_v14 }
 0x643   :  { %v494_v13 = vmul.f32 %v492_v15, %v488_v11 }
 0x6af   :  { %v497_v16 = vpop.permute.xlu1 %496 }
 0x6b0   :  { %v499_v17 = vmul.f32 %v497_v16, %v492_v15 }
 0x6b2   :  { %501 = vrot.lane.b32.xlu0 %v499_v17, %s2284_s22 }
 0x724   :  { %v502_v18 = vpop.permute.xlu0 %501 }
 0x725   :  { %v504_v20 = vadd.f32 %v502_v18, %v494_v13 }
 0x727   :  { %2236 = vtanh.f32 %v504_v20 }
 0x731   :  { %v2237_v26 = vpop.eup %2236 }
 0x732   :  { %507 = vrot.lane.b32.xlu1 %v2237_v26, %s2284_s22 }
 0x7a4   :  { %v508_v27 = vpop.permute.xlu1 %507 }
 0x7a5   :  { %v2594_v28 = vmul.f32 %v508_v27, %v492_v15 }
 0x7a7   :  { %512 = vrot.lane.b32.xlu1 %v2594_v28, %s2285_s19  ;;  %516 = vrot.lane.b32.xlu0 %v2594_v28, %s2286_s20  ;;  %v519_v29 = vrot.slane %v2594_v28, 1 }
 0x819   :  { %v517_v30 = vpop.permute.xlu0 %516  ;;  %v513_v31 = vpop.permute.xlu1 %512 }
 0x81a   :  { %v521_v32 = vsel %vm201_vm2, 0.0, %v517_v30  ;;  %v515_v35 = vsel %vm201_vm2, %v513_v31, 0.0 }
 0x81b   :  { %v522_v33 = vsel %vm400_vm4, %v521_v32, %v519_v29 }
 0x81c   :  { %v524_v34 = vrot.slane %v522_v33, 7 }
 0x81e   :  { %v526_v36 = vsel %vm405_vm3, %v515_v35, %v524_v34 }
 0x81f   :  { %1805 = vmatmul.mubr.msk.f32.vlgmr.msra.gmra.mrb[4].mxu1 %vm414_vm5, %v526_v36 }
 0x820   :  { %2108 = vmatpush3.bf16.msra.mxu1 %v2501_v39  ;;  %1858 = vmatprep.mubr.msk.f32.mxu1 %vm2282_vm0, %v2283_v4 }
 0x821   :  { %2109 = vmatprep.subr.bf16.mxu1 %v2281_v0 }
 0x824   :  { %2111 = vmatpush3.bf16.msra.mxu1 %v2507_v42 }
 0x825   :  { %2112 = vmatprep.subr.bf16.mxu1 %v2281_v0 }
 0x828   :  { %2114 = vmatpush3.bf16.msra.mxu1 %v2519_v46 }
 0x829   :  { %2115 = vmatprep.subr.bf16.mxu1 %v2281_v0 }
 0x82c   :  { %2117 = vmatpush3.bf16.msra.mxu1 %v2532_v50 }
 0x82d   :  { %2118 = vmatprep.subr.bf16.mxu1 %v2281_v0 }
 0x830   :  { %2120 = vmatpush3.bf16.msra.mxu1 %v2544_v53 }
 0x831   :  { %2121 = vmatprep.subr.bf16.mxu1 %v2281_v0 }
 0x834   :  { %2123 = vmatpush3.bf16.msra.mxu1 %v2559_v56 }
 0x835   :  { %2142 = vmatprep.subr.bf16.mxu1 %v2281_v0 }
 0x8f2   :  { %v599_v37 = vpop.f32.mrb[4].mxu1 }
 0x8f3   :  { %v600_v38 = vadd.f32 %v599_v37, %v2463_v19  ;;  %v1806_v40 = vpop.f32.mrb[5].mxu1 }
 0x8f5   :  { %2238 = vtanh.f32 %v600_v38  ;;  %v603_v45 = vmul.f32 0.5, %v600_v38 }
 0x8f7   :  { %2240 = vtanh.f32 %v603_v45 }
 0x8ff   :  { %v2239_v44 = vpop.eup %2238 }
 0x900   :  { %610 = vrot.lane.b32.xlu0 %v2239_v44, %s2284_s22 }
 0x901   :  { %v2241_v47 = vpop.eup %2240 }
 0x902   :  { %v605_v48 = vmul.f32 0.5, %v2241_v47 }
 0x904   :  { %v606_v49 = vadd.f32 0.5, %v605_v48 }
 0x906   :  { %v608_v54 = vmul.f32 %v606_v49, %v504_v20 }
 0x972   :  { %v611_v51 = vpop.permute.xlu0 %610 }
 0x973   :  { %v613_v52 = vmul.f32 %v611_v51, %v606_v49 }
 0x975   :  { %615 = vrot.lane.b32.xlu1 %v613_v52, %s2284_s22 }
 0x9e7   :  { %v616_v55 = vpop.permute.xlu1 %615 }
 0x9e8   :  { %v618_v57 = vadd.f32 %v616_v55, %v608_v54 }
 0x9ea   :  { %2242 = vtanh.f32 %v618_v57 }
 0x9f4   :  { %v2243_v58 = vpop.eup %2242 }
 0x9f5   :  { %621 = vrot.lane.b32.xlu0 %v2243_v58, %s2284_s22 }
 0xa67   :  { %v622_v19 = vpop.permute.xlu0 %621 }
 0xa68   :  { %v624_v59 = vmul.f32 %v622_v19, %v606_v49 }
 0xa6a   :  { %626 = vrot.lane.b32.xlu0 %v624_v59, %s2285_s19  ;;  %630 = vrot.lane.b32.xlu1 %v624_v59, %s2286_s20  ;;  %v633_v61 = vrot.slane %v624_v59, 1  ;;  %v1317_v30 = vsel %vm405_vm3, %v519_v29, %v624_v59 }
 0xadc   :  { %v631_v60 = vpop.permute.xlu1 %630  ;;  %v627_v62 = vpop.permute.xlu0 %626 }
 0xadd   :  { %v635_v63 = vsel %vm201_vm2, 0.0, %v631_v60  ;;  %v629_v3 = vsel %vm201_vm2, %v627_v62, 0.0 }
 0xade   :  { %v636_v1 = vsel %vm400_vm4, %v635_v63, %v633_v61 }
 0xadf   :  { %v638_v2 = vrot.slane %v636_v1, 7 }
 0xae1   :  { %v640_v5 = vsel %vm405_vm3, %v629_v3, %v638_v2 }
 0xae2   :  { %1832 = vmatmul.mubr.msk.f32.vlgmr.msra.gmra.mrb[6].mxu0 %vm414_vm5, %v640_v5 }
 0xae3   :  { %2126 = vmatpush3.bf16.msra.mxu0 %v2501_v39  ;;  %1885 = vmatprep.mubr.msk.f32.mxu0 %vm2282_vm0, %v2283_v4 }
 0xae4   :  { %2127 = vmatprep.subr.bf16.mxu0 %v2281_v0 }
 0xae7   :  { %2129 = vmatpush3.bf16.msra.mxu0 %v2507_v42 }
 0xae8   :  { %2130 = vmatprep.subr.bf16.mxu0 %v2281_v0 }
 0xaeb   :  { %2132 = vmatpush3.bf16.msra.mxu0 %v2519_v46 }
 0xaec   :  { %2133 = vmatprep.subr.bf16.mxu0 %v2281_v0 }
 0xaef   :  { %2135 = vmatpush3.bf16.msra.mxu0 %v2532_v50 }
 0xaf0   :  { %2136 = vmatprep.subr.bf16.mxu0 %v2281_v0 }
 0xaf3   :  { %2138 = vmatpush3.bf16.msra.mxu0 %v2544_v53 }
 0xaf4   :  { %2139 = vmatprep.subr.bf16.mxu0 %v2281_v0 }
 0xaf7   :  { %2141 = vmatpush3.bf16.msra.mxu0 %v2559_v56 }
 0xaf8   :  { %2160 = vmatprep.subr.bf16.mxu0 %v2281_v0 }
 0xbb5   :  { %v713_v6 = vpop.f32.mrb[6].mxu0 }
 0xbb6   :  { %v714_v7 = vadd.f32 %v713_v6, %v2468_v21  ;;  %v1833_v8 = vpop.f32.mrb[7].mxu0 }
 0xbb8   :  { %2244 = vtanh.f32 %v714_v7  ;;  %v717_v10 = vmul.f32 0.5, %v714_v7 }
 0xbba   :  { %2246 = vtanh.f32 %v717_v10 }
 0xbc2   :  { %v2245_v9 = vpop.eup %2244 }
 0xbc3   :  { %724 = vrot.lane.b32.xlu1 %v2245_v9, %s2284_s22 }
 0xbc4   :  { %v2247_v12 = vpop.eup %2246 }
 0xbc5   :  { %v719_v14 = vmul.f32 0.5, %v2247_v12 }
 0xbc7   :  { %v720_v15 = vadd.f32 0.5, %v719_v14 }
 0xbc9   :  { %v722_v11 = vmul.f32 %v720_v15, %v618_v57 }
 0xc35   :  { %v725_v16 = vpop.permute.xlu1 %724 }
 0xc36   :  { %v727_v17 = vmul.f32 %v725_v16, %v720_v15 }
 0xc38   :  { %729 = vrot.lane.b32.xlu0 %v727_v17, %s2284_s22 }
 0xcaa   :  { %v730_v13 = vpop.permute.xlu0 %729 }
 0xcab   :  { %v732_v18 = vadd.f32 %v730_v13, %v722_v11 }
 0xcad   :  { %2248 = vtanh.f32 %v732_v18 }
 0xcb7   :  { %v2249_v20 = vpop.eup %2248 }
 0xcb8   :  { %735 = vrot.lane.b32.xlu1 %v2249_v20, %s2284_s22 }
 0xd2a   :  { %v736_v21 = vpop.permute.xlu1 %735 }
 0xd2b   :  { %v738_v26 = vmul.f32 %v736_v21, %v720_v15 }
 0xd2d   :  { %v1304_v27 = vrot.slane %v738_v26, 7  ;;  %740 = vrot.lane.b32.xlu1 %v738_v26, %s2285_s19  ;;  %744 = vrot.lane.b32.xlu0 %v738_v26, %s2286_s20  ;;  %v747_v33 = vrot.slane %v738_v26, 1 }
 0xd2f   :  { %v1319_v31 = vsel %vm1318_vm6, %v1317_v30, %v1304_v27 }
 0xd9f   :  { %v745_v32 = vpop.permute.xlu0 %744  ;;  %v741_v34 = vpop.permute.xlu1 %740 }
 0xda0   :  { %v749_v35 = vsel %vm201_vm2, 0.0, %v745_v32  ;;  %v743_v38 = vsel %vm201_vm2, %v741_v34, 0.0 }
 0xda1   :  { %v750_v36 = vsel %vm400_vm4, %v749_v35, %v747_v33 }
 0xda2   :  { %v752_v37 = vrot.slane %v750_v36, 7 }
 0xda4   :  { %v754_v40 = vsel %vm405_vm3, %v743_v38, %v752_v37 }
 0xda5   :  { %1859 = vmatmul.mubr.msk.f32.vlgmr.msra.gmra.mrb[6].mxu1 %vm414_vm5, %v754_v40 }
 0xda6   :  { %2144 = vmatpush3.bf16.msra.mxu1 %v2501_v39  ;;  %1912 = vmatprep.mubr.msk.f32.mxu1 %vm2282_vm0, %v2283_v4 }
 0xda7   :  { %2145 = vmatprep.subr.bf16.mxu1 %v2281_v0 }
 0xdaa   :  { %2147 = vmatpush3.bf16.msra.mxu1 %v2507_v42 }
 0xdab   :  { %2148 = vmatprep.subr.bf16.mxu1 %v2281_v0 }
 0xdae   :  { %2150 = vmatpush3.bf16.msra.mxu1 %v2519_v46 }
 0xdaf   :  { %2151 = vmatprep.subr.bf16.mxu1 %v2281_v0 }
 0xdb2   :  { %2153 = vmatpush3.bf16.msra.mxu1 %v2532_v50 }
 0xdb3   :  { %2154 = vmatprep.subr.bf16.mxu1 %v2281_v0 }
 0xdb6   :  { %2156 = vmatpush3.bf16.msra.mxu1 %v2544_v53 }
 0xdb7   :  { %2157 = vmatprep.subr.bf16.mxu1 %v2281_v0 }
 0xdba   :  { %2159 = vmatpush3.bf16.msra.mxu1 %v2559_v56 }
 0xdbb   :  { %2178 = vmatprep.subr.bf16.mxu1 %v2281_v0 }
 0xe78   :  { %v827_v28 = vpop.f32.mrb[6].mxu1 }
 0xe79   :  { %v828_v29 = vadd.f32 %v827_v28, %v2472_v22  ;;  %v1860_v44 = vpop.f32.mrb[7].mxu1 }
 0xe7b   :  { %2250 = vtanh.f32 %v828_v29  ;;  %v831_v47 = vmul.f32 0.5, %v828_v29 }
 0xe7d   :  { %2252 = vtanh.f32 %v831_v47 }
 0xe85   :  { %v2251_v45 = vpop.eup %2250 }
 0xe86   :  { %838 = vrot.lane.b32.xlu0 %v2251_v45, %s2284_s22 }
 0xe87   :  { %v2253_v48 = vpop.eup %2252 }
 0xe88   :  { %v833_v49 = vmul.f32 0.5, %v2253_v48 }
 0xe8a   :  { %v834_v51 = vadd.f32 0.5, %v833_v49 }
 0xe8c   :  { %v836_v55 = vmul.f32 %v834_v51, %v732_v18 }
 0xef8   :  { %v839_v52 = vpop.permute.xlu0 %838 }
 0xef9   :  { %v841_v54 = vmul.f32 %v839_v52, %v834_v51 }
 0xefb   :  { %843 = vrot.lane.b32.xlu1 %v841_v54, %s2284_s22 }
 0xf6d   :  { %v844_v57 = vpop.permute.xlu1 %843 }
 0xf6e   :  { %v846_v58 = vadd.f32 %v844_v57, %v836_v55 }
 0xf70   :  { %2254 = vtanh.f32 %v846_v58 }
 0xf7a   :  { %v2255_v19 = vpop.eup %2254 }
 0xf7b   :  { %849 = vrot.lane.b32.xlu0 %v2255_v19, %s2284_s22 }
 0xfed   :  { %v850_v22 = vpop.permute.xlu0 %849 }
 0xfee   :  { %v852_v59 = vmul.f32 %v850_v22, %v834_v51 }
 0xff0   :  { %v1306_v60 = vrot.slane %v852_v59, 6  ;;  %854 = vrot.lane.b32.xlu0 %v852_v59, %s2285_s19  ;;  %858 = vrot.lane.b32.xlu1 %v852_v59, %s2286_s20  ;;  %v861_v63 = vrot.slane %v852_v59, 1 }
 0xff2   :  { %v1321_v61 = vsel %vm1320_vm7, %v1319_v31, %v1306_v60 }
0x1062   :  { %v859_v62 = vpop.permute.xlu1 %858  ;;  %v855_v1 = vpop.permute.xlu0 %854 }
0x1063   :  { %v863_v2 = vsel %vm201_vm2, 0.0, %v859_v62  ;;  %v857_v6 = vsel %vm201_vm2, %v855_v1, 0.0 }
0x1064   :  { %v864_v3 = vsel %vm400_vm4, %v863_v2, %v861_v63 }
0x1065   :  { %v866_v5 = vrot.slane %v864_v3, 7 }
0x1067   :  { %v868_v7 = vsel %vm405_vm3, %v857_v6, %v866_v5 }
0x1068   :  { %1886 = vmatmul.mubr.msk.f32.vlgmr.msra.gmra.mrb[8].mxu0 %vm414_vm5, %v868_v7 }
0x1069   :  { %2162 = vmatpush3.bf16.msra.mxu0 %v2501_v39  ;;  %1939 = vmatprep.mubr.msk.f32.mxu0 %vm2282_vm0, %v2283_v4 }
0x106a   :  { %2163 = vmatprep.subr.bf16.mxu0 %v2281_v0 }
0x106d   :  { %2165 = vmatpush3.bf16.msra.mxu0 %v2507_v42 }
0x106e   :  { %2166 = vmatprep.subr.bf16.mxu0 %v2281_v0 }
0x1071   :  { %2168 = vmatpush3.bf16.msra.mxu0 %v2519_v46 }
0x1072   :  { %2169 = vmatprep.subr.bf16.mxu0 %v2281_v0 }
0x1075   :  { %2171 = vmatpush3.bf16.msra.mxu0 %v2532_v50 }
0x1076   :  { %2172 = vmatprep.subr.bf16.mxu0 %v2281_v0 }
0x1079   :  { %2174 = vmatpush3.bf16.msra.mxu0 %v2544_v53 }
0x107a   :  { %2175 = vmatprep.subr.bf16.mxu0 %v2281_v0 }
0x107d   :  { %2177 = vmatpush3.bf16.msra.mxu0 %v2559_v56 }
0x107e   :  { %2196 = vmatprep.subr.bf16.mxu0 %v2281_v0 }
0x113b   :  { %v941_v39 = vpop.f32.mrb[8].mxu0 }
0x113c   :  { %v942_v42 = vadd.f32 %v941_v39, %v2476_v23  ;;  %v1887_v8 = vpop.f32.mrb[9].mxu0 }
0x113e   :  { %2256 = vtanh.f32 %v942_v42  ;;  %v945_v10 = vmul.f32 0.5, %v942_v42 }
0x1140   :  { %2258 = vtanh.f32 %v945_v10 }
0x1148   :  { %v2257_v9 = vpop.eup %2256 }
0x1149   :  { %952 = vrot.lane.b32.xlu1 %v2257_v9, %s2284_s22 }
0x114a   :  { %v2259_v12 = vpop.eup %2258 }
0x114b   :  { %v947_v14 = vmul.f32 0.5, %v2259_v12 }
0x114d   :  { %v948_v15 = vadd.f32 0.5, %v947_v14 }
0x114f   :  { %v950_v11 = vmul.f32 %v948_v15, %v846_v58 }
0x11bb   :  { %v953_v16 = vpop.permute.xlu1 %952 }
0x11bc   :  { %v955_v17 = vmul.f32 %v953_v16, %v948_v15 }
0x11be   :  { %957 = vrot.lane.b32.xlu0 %v955_v17, %s2284_s22 }
0x1230   :  { %v958_v13 = vpop.permute.xlu0 %957 }
0x1231   :  { %v960_v18 = vadd.f32 %v958_v13, %v950_v11 }
0x1233   :  { %2260 = vtanh.f32 %v960_v18 }
0x123d   :  { %v2261_v20 = vpop.eup %2260 }
0x123e   :  { %963 = vrot.lane.b32.xlu1 %v2261_v20, %s2284_s22 }
0x12b0   :  { %v964_v23 = vpop.permute.xlu1 %963 }
0x12b1   :  { %v966_v21 = vmul.f32 %v964_v23, %v948_v15  ;;  %v1204_v23 = vrot.slane %v2412_v43, 4 }
0x12b3   :  { %v1308_v26 = vrot.slane %v966_v21, 5  ;;  %968 = vrot.lane.b32.xlu1 %v966_v21, %s2285_s19  ;;  %972 = vrot.lane.b32.xlu0 %v966_v21, %s2286_s20  ;;  %v975_v31 = vrot.slane %v966_v21, 1 }
0x12b5   :  { %v1323_v27 = vsel %vm1322_vm8, %v1321_v61, %v1308_v26 }
0x1325   :  { %v973_v30 = vpop.permute.xlu0 %972  ;;  %v969_v32 = vpop.permute.xlu1 %968 }
0x1326   :  { %v977_v33 = vsel %vm201_vm2, 0.0, %v973_v30  ;;  %v971_v36 = vsel %vm201_vm2, %v969_v32, 0.0 }
0x1327   :  { %v978_v34 = vsel %vm400_vm4, %v977_v33, %v975_v31 }
0x1328   :  { %v980_v35 = vrot.slane %v978_v34, 7 }
0x132a   :  { %v982_v37 = vsel %vm405_vm3, %v971_v36, %v980_v35 }
0x132b   :  { %1913 = vmatmul.mubr.msk.f32.vlgmr.msra.gmra.mrb[8].mxu1 %vm414_vm5, %v982_v37 }
0x132c   :  { %2180 = vmatpush3.bf16.msra.mxu1 %v2519_v46  ;;  %1958 = vmatprep.mubr.msk.f32.mxu1 %vm2282_vm0, %v2283_v4 }
0x132d   :  { %2181 = vmatprep.subr.bf16.mxu1 %v2281_v0 }
0x1330   :  { %2183 = vmatpush3.bf16.msra.mxu1 %v2532_v50 }
0x1331   :  { %2184 = vmatprep.subr.bf16.mxu1 %v2281_v0 }
0x1334   :  { %2186 = vmatpush3.bf16.msra.mxu1 %v2544_v53 }
0x1335   :  { %2187 = vmatprep.subr.bf16.mxu1 %v2281_v0 }
0x1338   :  { %2189 = vmatpush3.bf16.msra.mxu1 %v2559_v56 }
0x1339   :  { %2190 = vmatprep.subr.bf16.mxu1 %v2281_v0 }
0x13fe   :  { %v1055_v38 = vpop.f32.mrb[8].mxu1 }
0x13ff   :  { %v1056_v46 = vadd.f32 %v1055_v38, %v2480_v24  ;;  %v1914_v40 = vpop.f32.mrb[9].mxu1 }
0x1400   :  { %v1331_v40 = vld [vmem:[%s2826_s1 + $0x160] sm:$0xff] }
0x1401   :  { %2262 = vtanh.f32 %v1056_v46  ;;  %v1059_v29 = vmul.f32 0.5, %v1056_v46  ;;  %v1330_v46 = vld [vmem:[%s2826_s1 + $0x158] sm:$0xff] }
0x1403   :  { %2264 = vtanh.f32 %v1059_v29  ;;  %v2191_v29 = vpack.c.bf16 %v1331_v40, %v1330_v46 }
0x140b   :  { %v2263_v28 = vpop.eup %2262 }
0x140c   :  { %1066 = vrot.lane.b32.xlu0 %v2263_v28, %s2284_s22  ;;  %v1332_v28 = vld [vmem:[%s2826_s1 + $0x168] sm:$0xff] }
0x140d   :  { %v2265_v50 = vpop.eup %2264 }
0x140e   :  { %v1061_v44 = vmul.f32 0.5, %v2265_v50  ;;  %v1333_v50 = vld [vmem:[%s2826_s1 + $0x170] sm:$0xff] }
0x1410   :  { %v1062_v45 = vadd.f32 0.5, %v1061_v44  ;;  %v2194_v44 = vpack.c.bf16 %v1333_v50, %v1332_v28 }
0x1412   :  { %v1064_v56 = vmul.f32 %v1062_v45, %v960_v18 }
0x147e   :  { %v1067_v53 = vpop.permute.xlu0 %1066 }
0x147f   :  { %v1069_v47 = vmul.f32 %v1067_v53, %v1062_v45  ;;  %v1414_v53 = vld [vmem:[%s2826_s1 + $0x178] sm:$0xff] }
0x1481   :  { %1071 = vrot.lane.b32.xlu1 %v1069_v47, %s2284_s22  ;;  %v1415_v47 = vld [vmem:[%s2826_s1 + $0x180] sm:$0xff] }
0x14f3   :  { %v1072_v48 = vpop.permute.xlu1 %1071 }
0x14f4   :  { %v1074_v49 = vadd.f32 %v1072_v48, %v1064_v56  ;;  %v1416_v56 = vld [vmem:[%s2826_s1 + $0x188] sm:$0xff]  ;;  %v2197_v48 = vpack.c.bf16 %v1415_v47, %v1414_v53 }
0x14f6   :  { %2266 = vtanh.f32 %v1074_v49 }
0x1500   :  { %v2267_v51 = vpop.eup %2266 }
0x1501   :  { %1077 = vrot.lane.b32.xlu0 %v2267_v51, %s2284_s22 }
0x1573   :  { %v1078_v24 = vpop.permute.xlu0 %1077 }
0x1574   :  { %v1080_v52 = vmul.f32 %v1078_v24, %v1062_v45  ;;  %v1418_v24 = vld [vmem:[%s2826_s1 + $0x198] sm:$0xff] }
0x1576   :  { %v1310_v54 = vrot.slane %v1080_v52, 4  ;;  %1082 = vrot.lane.b32.xlu0 %v1080_v52, %s2285_s19  ;;  %1086 = vrot.lane.b32.xlu1 %v1080_v52, %s2286_s20  ;;  %v1089_v58 = vrot.slane %v1080_v52, 1  ;;  %v1419_v52 = vld [vmem:[%s2826_s1 + $0x1a0] sm:$0xff] }
0x1578   :  { %v1325_v55 = vsel %vm1324_vm9, %v1323_v27, %v1310_v54 }
0x15e8   :  { %v1087_v57 = vpop.permute.xlu1 %1086  ;;  %v1083_v19 = vpop.permute.xlu0 %1082 }
0x15e9   :  { %v1091_v22 = vsel %vm201_vm2, 0.0, %v1087_v57  ;;  %v1085_v61 = vsel %vm201_vm2, %v1083_v19, 0.0  ;;  %v1421_v19 = vld [vmem:[%s2826_s1 + $0x1b0] sm:$0xff] }
0x15ea   :  { %v1092_v59 = vsel %vm400_vm4, %v1091_v22, %v1089_v58  ;;  %v1420_v58 = vld [vmem:[%s2826_s1 + $0x1a8] sm:$0xff] }
0x15eb   :  { %v1094_v60 = vrot.slane %v1092_v59, 7  ;;  %v2206_v59 = vpack.c.bf16 %v1421_v19, %v1420_v58 }
0x15ed   :  { %v1096_v62 = vsel %vm405_vm3, %v1085_v61, %v1094_v60  ;;  %v1422_v61 = vld [vmem:[%s2826_s1 + $0x1b8] sm:$0xff] }
0x15ee   :  { %1940 = vmatmul.mubr.msk.f32.vlgmr.msra.gmra.mrb[10].mxu0 %vm414_vm5, %v1096_v62  ;;  %v1423_v62 = vld [vmem:[%s2826_s1 + $0x1c0] sm:$0xff] }
0x15ef   :  { %2004 = vmatprep.mubr.msk.f32.mxu0 %vm2282_vm0, %v2283_v4  ;;  %2198 = vmatpush3.bf16.msra.mxu0 %v2197_v48 }
0x15f0   :  { %2199 = vmatprep.subr.bf16.mxu0 %v2281_v0 }
0x16c1   :  { %v1169_v63 = vpop.f32.mrb[10].mxu0 }
0x16c2   :  { %v1170_v1 = vadd.f32 %v1169_v63, %v2484_v25  ;;  %v1941_v2 = vpop.f32.mrb[11].mxu0  ;;  %v2209_v63 = vpack.c.bf16 %v1423_v62, %v1422_v61 }
0x16c3   :  { %v1425_v2 = vld [vmem:[%s2826_s1 + $0x1d0] sm:$0xff] }
0x16c4   :  { %2268 = vtanh.f32 %v1170_v1  ;;  %v1173_v5 = vmul.f32 0.5, %v1170_v1  ;;  %v1424_v1 = vld [vmem:[%s2826_s1 + $0x1c8] sm:$0xff] }
0x16c6   :  { %2270 = vtanh.f32 %v1173_v5  ;;  %v1426_v5 = vld [vmem:[%s2826_s1 + $0x1d8] sm:$0xff] }
0x16ce   :  { %v2269_v3 = vpop.eup %2268 }
0x16cf   :  { %1180 = vrot.lane.b32.xlu1 %v2269_v3, %s2284_s22  ;;  %v2212_v3 = vpack.c.bf16 %v1425_v2, %v1424_v1 }
0x16d0   :  { %v2271_v6 = vpop.eup %2270 }
0x16d1   :  { %v1175_v7 = vmul.f32 0.5, %v2271_v6  ;;  %v1427_v6 = vld [vmem:[%s2826_s1 + $0x1e0] sm:$0xff] }
0x16d3   :  { %v1176_v39 = vadd.f32 0.5, %v1175_v7  ;;  %v2215_v7 = vpack.c.bf16 %v1427_v6, %v1426_v5 }
0x16d5   :  { %v1178_v9 = vmul.f32 %v1176_v39, %v1074_v49  ;;  %v1417_v49 = vld [vmem:[%s2826_s1 + $0x190] sm:$0xff] }
0x16d6   :  { %v2200_v51 = vpack.c.bf16 %v1417_v49, %v1416_v56 }
0x16d8   :  { %2201 = vmatpush3.bf16.msra.mxu0 %v2200_v51 }
0x16d9   :  { %2202 = vmatprep.subr.bf16.mxu0 %v2281_v0 }
0x1741   :  { %v1181_v42 = vpop.permute.xlu1 %1180 }
0x1742   :  { %v1183_v8 = vmul.f32 %v1181_v42, %v1176_v39  ;;  %v1428_v42 = vld [vmem:[%s2826_s1 + $0x1e8] sm:$0xff] }
0x1744   :  { %1185 = vrot.lane.b32.xlu0 %v1183_v8, %s2284_s22  ;;  %v1429_v8 = vld [vmem:[%s2826_s1 + $0x1f0] sm:$0xff] }
0x17b6   :  { %v1186_v10 = vpop.permute.xlu0 %1185 }
0x17b7   :  { %v1188_v12 = vadd.f32 %v1186_v10, %v1178_v9  ;;  %v2218_v9 = vpack.c.bf16 %v1429_v8, %v1428_v42  ;;  %v1336_v10 = vsub.s32 5, %v2406_v41 }
0x17b9   :  { %2272 = vtanh.f32 %v1188_v12  ;;  %v1285_v37 = vrot.slane %v1188_v12, 1  ;;  %v2280_v12 = vld [vmem:[%s2828_s2] sm:$0xff] }
0x17c3   :  { %v2273_v14 = vpop.eup %2272 }
0x17c4   :  { %1191 = vrot.lane.b32.xlu1 %v2273_v14, %s2284_s22 }
0x1836   :  { %v1192_v25 = vpop.permute.xlu1 %1191 }
0x1837   :  { %v1194_v15 = vmul.f32 %v1192_v25, %v1176_v39 }
0x1839   :  { %v1312_v16 = vrot.slane %v1194_v15, 3  ;;  %1196 = vrot.lane.b32.xlu0 %v1194_v15, %s2285_s19  ;;  %v1199_v17 = vrot.slane %v1194_v15, 1 }
0x183b   :  { %1200 = vrot.lane.b32.xlu1 %v1199_v17, %s2286_s20  ;;  %v1327_v11 = vsel %vm1326_vm10, %v1325_v55, %v1312_v16  ;;  %v2203_v55 = vpack.c.bf16 %v1419_v52, %v1418_v24  ;;  %v1432_v17 = vsub.s32 6, %v2406_v41 }
0x183d   :  { %2204 = vmatpush3.bf16.msra.mxu0 %v2203_v55 }
0x183e   :  { %2205 = vmatprep.subr.bf16.mxu0 %v2281_v0 }
0x1841   :  { %2207 = vmatpush3.bf16.msra.mxu0 %v2206_v59 }
0x1842   :  { %2208 = vmatprep.subr.bf16.mxu0 %v2281_v0 }
0x1845   :  { %2210 = vmatpush3.bf16.msra.mxu0 %v2209_v63 }
0x1846   :  { %2211 = vmatprep.subr.bf16.mxu0 %v2281_v0 }
0x1849   :  { %2213 = vmatpush3.bf16.msra.mxu0 %v2212_v3 }
0x184a   :  { %2214 = vmatprep.subr.bf16.mxu0 %v2281_v0 }
0x184d   :  { %2216 = vmatpush3.bf16.msra.mxu0 %v2215_v7 }
0x184e   :  { %2217 = vmatprep.subr.bf16.mxu0 %v2281_v0 }
0x1851   :  { %2219 = vmatpush3.bf16.msra.mxu0 %v2218_v9 }
0x18ab   :  { %v1197_v13 = vpop.permute.xlu0 %1196 }
0x18ad   :  { %v1201_v18 = vpop.permute.xlu1 %1200 }
0x18ae   :  { %v1203_v20 = vsel %vm201_vm2, %v1197_v13, %v1201_v18 }
0x18af   :  { %1959 = vmatmul.mubr.msk.f32.vlgmr.msra.gmra.mrb[10].mxu1 %vm400_vm4, %v1203_v20 }
0x18b0   :  { %1969 = vmatprep.mubr.msk.f32.mxu1 %vm2282_vm0, %v2283_v4  ;;  %2192 = vmatpush3.bf16.msra.mxu1 %v2191_v29 }
0x18b1   :  { %2193 = vmatprep.subr.bf16.mxu1 %v2281_v0  ;;  %v1337_v0 = vrot.slane %v2280_v12, %v1336_v10 }
0x18b4   :  { %2195 = vmatpush3.bf16.msra.mxu1 %v2194_v44 }
0x1982   :  { %v1275_v21 = vpop.f32.mrb[10].mxu1 }
0x1983   :  { %v1276_v26 = vadd.f32 %v1275_v21, %v1204_v23  ;;  %v1960_v27 = vpop.f32.mrb[11].mxu1 }
0x1985   :  { %2274 = vtanh.f32 %v1276_v26  ;;  %v1279_v31 = vmul.f32 0.5, %v1276_v26 }
0x1987   :  { %2276 = vtanh.f32 %v1279_v31 }
0x198f   :  { %v2275_v30 = vpop.eup %2274 }
0x1990   :  { %1289 = vrot.lane.b32.xlu0 %v2275_v30, %s2284_s22 }
0x1991   :  { %v2277_v32 = vpop.eup %2276 }
0x1992   :  { %v1281_v33 = vmul.f32 0.5, %v2277_v32 }
0x1994   :  { %v1282_v34 = vadd.f32 0.5, %v1281_v33 }
0x1996   :  { %v1287_v4 = vmul.f32 %v1285_v37, %v1282_v34 }
0x1a02   :  { %v1290_v35 = vpop.permute.xlu0 %1289 }
0x1a03   :  { %v1292_v36 = vmul.f32 %v1290_v35, %v1282_v34 }
0x1a05   :  { %1294 = vrot.lane.b32.xlu1 %v1292_v36, %s2284_s22 }
0x1a77   :  { %v1295_v38 = vpop.permute.xlu1 %1294 }
0x1a78   :  { %v1297_v43 = vadd.f32 %v1295_v38, %v1287_v4 }
0x1a7a   :  { %2278 = vtanh.f32 %v1297_v43 }
0x1a84   :  { %v2279_v45 = vpop.eup %2278 }
0x1a85   :  { %1300 = vrot.lane.b32.xlu0 %v2279_v45, %s2284_s22 }
0x1af7   :  { %v1301_v54 = vpop.permute.xlu0 %1300 }
0x1af8   :  { %v1303_v57 = vmul.f32 %v1301_v54, %v1282_v34 }
0x1afa   :  { %v1315_v22 = vrot.slane %v1303_v57, 1 }
0x1afc   :  { %v1329_v60 = vsel %vm1328_vm11, %v1327_v11, %v1315_v22  ;;  %v1433_v11 = vrot.slane %v2280_v12, %v1432_v17 }
0x1afd   :  { %1339 = vrot.lane.b32.xlu1 %v1329_v60, %s2285_s19 }
0x1b6f   :  { %v1340_v39 = vpop.permute.xlu1 %1339 }
0x1b70   :  { %1970 = vmatmul.mubr.msk.f32.vlgmr.msra.gmra.mrb[12].mxu1 %vm201_vm2, %v1340_v39 }
0x1c43   :  { %v1409_v14 = vpop.f32.mrb[12].mxu1 }
0x1c44   :  { %v1410_v25 = vadd.f32 %v1409_v14, %v1337_v0  ;;  %v1971_v15 = vpop.f32.mrb[13].mxu1 }
0x1c46   :  { %v1413_v16 = vmax.f32 %v1410_v25, 0.0 }
0x1c48   :  { %2005 = vmatmul.mubr.f32.vlgmr.msra.gmra.mrb[12].mxu0 %v1413_v16 }
0x1d1b   :  { %v1500_v13 = vpop.f32.mrb[12].mxu0 }
0x1d1c   :  { %v1501_v18 = vadd.f32 %v1500_v13, %v1433_v11  ;;  %v2006_v20 = vpop.f32.mrb[13].mxu0 }
0x1d1e   :  { %v1504_v23 = vmax.f32 %v1501_v18, 0.0 }
0x1d20   :  { %1505 = vst [vmem:[%s2829_s3] sm:$0xff] %v1504_v23 }

</bundles_post_ra>
